<compile_context>
chip_gen: v5e
topology: v5e:2x2
jax: 0.10.0
libtpu: 0.0.40
codegen_flags: <defaults>
</compile_context>

<pallas_src>
import functools

import jax
import jax.numpy as jnp
from jax import lax
from jax.experimental import pallas as pl
from jax.experimental.pallas import tpu as pltpu

# ---------------- config (small Qwen-like) ----------------
VOCAB = 128
HIDDEN = 32
N_LAYERS = 2
N_HEADS = 2
HEAD_DIM = HIDDEN // N_HEADS      # 16
HALF = HEAD_DIM // 2              # 8
INTERMEDIATE = 64
EPS = 1e-6
DTYPE = jnp.bfloat16
NEG_INF = -1e9

_VMEM = functools.partial(pl.BlockSpec, memory_space=pltpu.MemorySpace.VMEM)
_SMEM = functools.partial(pl.BlockSpec, memory_space=pltpu.MemorySpace.SMEM)

# ---------------- packed weight blob layout (per layer, 8-aligned rows, 128 cols) ----------------
BLOB_COLS = 128
R_INNORM = 0        # (1, H)
R_WQKV = 8          # (H, 3H)
R_BQKV = 40         # (1, 3H)
R_WO = 48           # (H, H)
R_PNORM = 80        # (1, H)
R_WGU = 88          # (H, 2I)
R_WD = 120          # (I, H)
ROWS_PER_LAYER = 184

# ---------------- bf16 tables blob layout ----------------
T_EMBED = 0                 # (VOCAB, H)
T_ROT = VOCAB               # (H, H) block-diag rotate-half matrix
T_FNORM = T_ROT + HIDDEN    # (1, H)
T_REGW = T_FNORM + 8        # (1, H)
T_ROWS = T_REGW + 8


# ---------------- single fused Pallas kernel ----------------
def _fused_forward_kernel(B, S, ids_ref, wblob_ref, tb_ref, tf_ref, reg_b_ref, out_ref):
    BS = B * S
    scale = jnp.float32(1.0 / (HEAD_DIM ** 0.5))

    def rms(t, w):
        tf32 = t.astype(jnp.float32)
        var = jnp.mean(tf32 * tf32, axis=-1, keepdims=True)
        return (tf32 * lax.rsqrt(var + EPS) * w.astype(jnp.float32)).astype(DTYPE)

    # ---- tables (static slices of the packed blobs) ----
    embed = tb_ref[T_EMBED:T_EMBED + VOCAB, 0:HIDDEN]           # (VOCAB, H) bf16
    rot_full = tb_ref[T_ROT:T_ROT + HIDDEN, 0:HIDDEN]           # (H, H) bf16
    final_norm_w = tb_ref[T_FNORM:T_FNORM + 1, 0:HIDDEN]        # (1, H) bf16
    reg_w = tb_ref[T_REGW:T_REGW + 1, 0:HIDDEN].astype(jnp.float32)

    cos = tf_ref[0:BS, 0:HIDDEN]                                # (BS, H) f32 (tiled per head)
    sin = tf_ref[BS:2 * BS, 0:HIDDEN]                           # (BS, H) f32
    bias = tf_ref[2 * BS:3 * BS, 0:BS]                          # (BS, BS) f32 block-diag mask

    # ---- embedding lookup as one-hot matmul (exact; keeps everything in one kernel) ----
    one_hot = (ids_ref[...] == lax.broadcasted_iota(jnp.int32, (BS, VOCAB), 1)).astype(DTYPE)
    x = jnp.dot(one_hot, embed, preferred_element_type=jnp.float32).astype(DTYPE)   # (BS, H)

    # ---- full-width RoPE: rotate-half via one block-diagonal (H, H) matmul ----
    def rope(t):                        # t: (BS, H) bf16
        rot = jnp.dot(t, rot_full, preferred_element_type=jnp.float32)
        return (t.astype(jnp.float32) * cos + rot * sin).astype(DTYPE)

    for l in range(N_LAYERS):
        base = l * ROWS_PER_LAYER
        in_norm_w = wblob_ref[base + R_INNORM:base + R_INNORM + 1, 0:HIDDEN]
        wqkv = wblob_ref[base + R_WQKV:base + R_WQKV + HIDDEN, 0:3 * HIDDEN]
        bqkv = wblob_ref[base + R_BQKV:base + R_BQKV + 1, 0:3 * HIDDEN]
        wo = wblob_ref[base + R_WO:base + R_WO + HIDDEN, 0:HIDDEN]
        post_norm_w = wblob_ref[base + R_PNORM:base + R_PNORM + 1, 0:HIDDEN]
        wgu = wblob_ref[base + R_WGU:base + R_WGU + HIDDEN, 0:2 * INTERMEDIATE]
        wd = wblob_ref[base + R_WD:base + R_WD + INTERMEDIATE, 0:HIDDEN]

        # ---------- self-attention block (fused QKV, batched over B per head) ----------
        h = rms(x, in_norm_w)
        qkv = (jnp.dot(h, wqkv, preferred_element_type=jnp.float32)
               + bqkv.astype(jnp.float32)).astype(DTYPE)                      # (BS, 3H)
        q = rope(qkv[:, 0:HIDDEN])
        k = rope(qkv[:, HIDDEN:2 * HIDDEN])
        v = qkv[:, 2 * HIDDEN:3 * HIDDEN]

        heads = []
        for hh in range(N_HEADS):
            c0, c1 = hh * HEAD_DIM, (hh + 1) * HEAD_DIM
            scores = lax.dot_general(
                q[:, c0:c1], k[:, c0:c1], (((1,), (1,)), ((), ())),
                preferred_element_type=jnp.float32) * scale + bias            # (BS, BS) f32
            m = jnp.max(scores, axis=-1, keepdims=True)
            p = jnp.exp(scores - m)
            p = p * pl.reciprocal(jnp.sum(p, axis=-1, keepdims=True), approx=True)
            heads.append(jnp.dot(p.astype(DTYPE), v[:, c0:c1],
                                 preferred_element_type=jnp.float32).astype(DTYPE))
        attn = jnp.concatenate(heads, axis=-1)                                # (BS, H)
        x = x + jnp.dot(attn, wo, preferred_element_type=jnp.float32).astype(DTYPE)

        # ---------- SwiGLU MLP block (fused gate/up, lane-dense 128-wide) ----------
        h2 = rms(x, post_norm_w)
        gu = jnp.dot(h2, wgu, preferred_element_type=jnp.float32)             # (BS, 2I) f32
        g = gu[:, 0:INTERMEDIATE]
        u = gu[:, INTERMEDIATE:2 * INTERMEDIATE]
        act = ((g * jax.nn.sigmoid(g)) * u).astype(DTYPE)
        x = x + jnp.dot(act, wd, preferred_element_type=jnp.float32).astype(DTYPE)

    # ---------- final norm + regression head, vectorized over all rows ----------
    # (the host extracts row b*S + S-1 per batch -> hidden_states[-1][:, -1, :])
    feat = rms(x, final_norm_w).astype(jnp.float32)                           # (BS, H)
    pred = jnp.sum(feat * reg_w, axis=-1, keepdims=True) + reg_b_ref[0, 0]    # (BS, 1) f32
    out_ref[...] = pred.astype(out_ref.dtype)


# ---------------- host-side helpers ----------------
def _rope_tables(B, S):
    inv_freq = 1.0 / (10000.0 ** (jnp.arange(HALF, dtype=jnp.float32) / HALF))
    pos = jnp.arange(S, dtype=jnp.float32)
    freqs = pos[:, None] * inv_freq[None, :]                                  # (S, HALF)
    cos_hd = jnp.concatenate([jnp.cos(freqs)] * 2, axis=-1)                   # (S, HEAD_DIM)
    sin_hd = jnp.concatenate([jnp.sin(freqs)] * 2, axis=-1)
    cos = jnp.tile(cos_hd, (B, N_HEADS))                                      # (B*S, HIDDEN)
    sin = jnp.tile(sin_hd, (B, N_HEADS))
    return cos, sin


def _rope_rot_matrix_full():
    # rot = t @ R implements rotate_half per head; full matrix is block-diagonal over heads.
    r = jnp.zeros((HEAD_DIM, HEAD_DIM), jnp.float32)
    r = r.at[jnp.arange(HALF) + HALF, jnp.arange(HALF)].set(-1.0)
    r = r.at[jnp.arange(HALF), jnp.arange(HALF) + HALF].set(1.0)
    return jnp.kron(jnp.eye(N_HEADS, dtype=jnp.float32), r).astype(DTYPE)     # (HIDDEN, HIDDEN)


def _attn_bias(attention_mask):
    # Block-diagonal (over batch) causal + key-padding additive bias, shape (B*S, B*S), f32.
    B, S = attention_mask.shape
    BS = B * S
    idx = jnp.arange(BS)
    bi, qi = idx // S, idx % S
    same_batch = bi[:, None] == bi[None, :]
    causal = qi[:, None] >= qi[None, :]
    key_ok = (attention_mask.reshape(-1) != 0)[None, :]
    allow = same_batch & causal & key_ok
    return jnp.where(allow, 0.0, NEG_INF).astype(jnp.float32)


def init_params(key):
    def w(k, shape, scale=0.02):
        return (scale * jax.random.normal(k, shape, jnp.float32)).astype(DTYPE)

    keys = jax.random.split(key, 2 + 7 * N_LAYERS)
    params = {
        "embed": w(keys[0], (VOCAB, HIDDEN)),
        "final_norm": jnp.ones((1, HIDDEN), DTYPE),
        "reg_w": w(keys[1], (1, HIDDEN)),               # nn.Linear(H, 1).weight layout
        "reg_b": jnp.zeros((1, 1), jnp.float32),
        "reg_mean": jnp.float32(0.0),
        "reg_std": jnp.float32(1.0),
        "input_norm": jnp.ones((N_LAYERS, 1, HIDDEN), DTYPE),
        "post_norm": jnp.ones((N_LAYERS, 1, HIDDEN), DTYPE),
        "bq": jnp.zeros((N_LAYERS, 1, HIDDEN), DTYPE),
        "bk": jnp.zeros((N_LAYERS, 1, HIDDEN), DTYPE),
        "bv": jnp.zeros((N_LAYERS, 1, HIDDEN), DTYPE),
    }
    wq, wk, wv, wo, wg, wu, wd = [], [], [], [], [], [], []
    idx = 2
    for _ in range(N_LAYERS):
        k7 = keys[idx:idx + 7]
        idx += 7
        wq.append(w(k7[0], (HIDDEN, HIDDEN)))
        wk.append(w(k7[1], (HIDDEN, HIDDEN)))
        wv.append(w(k7[2], (HIDDEN, HIDDEN)))
        wo.append(w(k7[3], (HIDDEN, HIDDEN)))
        wg.append(w(k7[4], (HIDDEN, INTERMEDIATE)))
        wu.append(w(k7[5], (HIDDEN, INTERMEDIATE)))
        wd.append(w(k7[6], (INTERMEDIATE, HIDDEN)))
    params.update(
        wq=jnp.stack(wq), wk=jnp.stack(wk), wv=jnp.stack(wv), wo=jnp.stack(wo),
        wg=jnp.stack(wg), wu=jnp.stack(wu), wd=jnp.stack(wd),
    )
    return params


def _pad_blob(a, rows, cols=BLOB_COLS):
    a = a.astype(DTYPE)
    return jnp.pad(a, ((0, rows - a.shape[0]), (0, cols - a.shape[1])))


def pack_params(params):
    """Pack all weights into 2 VMEM blobs (done once, outside the hot path)."""
    slabs = []
    for l in range(N_LAYERS):
        wqkv = jnp.concatenate([params["wq"][l], params["wk"][l], params["wv"][l]], axis=1)
        bqkv = jnp.concatenate([params["bq"][l], params["bk"][l], params["bv"][l]], axis=1)
        wgu = jnp.concatenate([params["wg"][l], params["wu"][l]], axis=1)
        slabs.append(jnp.concatenate([
            _pad_blob(params["input_norm"][l], R_WQKV - R_INNORM),
            _pad_blob(wqkv, R_BQKV - R_WQKV),
            _pad_blob(bqkv, R_WO - R_BQKV),
            _pad_blob(params["wo"][l], R_PNORM - R_WO),
            _pad_blob(params["post_norm"][l], R_WGU - R_PNORM),
            _pad_blob(wgu, R_WD - R_WGU),
            _pad_blob(params["wd"][l], ROWS_PER_LAYER - R_WD),
        ], axis=0))
    wblob = jnp.concatenate(slabs, axis=0)                       # (N_LAYERS*184, 128) bf16

    tblob = jnp.concatenate([
        _pad_blob(params["embed"], T_ROT - T_EMBED),
        _pad_blob(_rope_rot_matrix_full(), T_FNORM - T_ROT),
        _pad_blob(params["final_norm"], T_REGW - T_FNORM),
        _pad_blob(params["reg_w"], T_ROWS - T_REGW),
    ], axis=0)                                                   # (T_ROWS, 128) bf16

    return {
        "wblob": wblob, "tblob": tblob,
        "reg_b": params["reg_b"].astype(jnp.float32),
        "reg_mean": params["reg_mean"], "reg_std": params["reg_std"],
    }


def regression_forward(packed, input_ids, attention_mask):
    B, S = input_ids.shape
    BS = B * S
    ids = input_ids.astype(jnp.int32).reshape(BS, 1)

    # f32 tables blob: cos | sin | block-diagonal attention bias (built per call, tiny).
    cos, sin = _rope_tables(B, S)
    bias = _attn_bias(attention_mask)
    W = max(HIDDEN, BS)

    def padw(a):
        return jnp.pad(a.astype(jnp.float32), ((0, 0), (0, W - a.shape[1])))

    tf32 = jnp.concatenate([padw(cos), padw(sin), padw(bias)], axis=0)   # (3*BS, W)

    kernel = functools.partial(_fused_forward_kernel, B, S)
    out = pl.pallas_call(
        kernel,
        in_specs=[_VMEM(), _VMEM(), _VMEM(), _VMEM(), _SMEM()],  # reg_b scalar in SMEM
        out_specs=_VMEM(),
        out_shape=jax.ShapeDtypeStruct((BS, 1), DTYPE),
    )(ids, packed["wblob"], packed["tblob"], tf32, packed["reg_b"])

    # features = hidden_states[-1][:, -1, :] -> pick last position of each row, squeeze(-1).
    return out.reshape(B, S)[:, -1]                              # (B,) bf16


def predict_denormalized(packed, input_ids, attention_mask):
    pred = regression_forward(packed, input_ids, attention_mask).astype(jnp.float32)
    return pred * packed["reg_std"] + packed["reg_mean"]


if __name__ == "__main__":
    B, S = 2, 8
    root = jax.random.PRNGKey(0)
    k_param, k_ids = jax.random.split(root)
    params = init_params(k_param)
    packed = pack_params(params)

    input_ids = jax.random.randint(k_ids, (B, S), 0, VOCAB, dtype=jnp.int32)
    attention_mask = jnp.array(
        [[1, 1, 1, 1, 1, 1, 1, 1],
         [1, 1, 1, 1, 1, 1, 0, 0]], dtype=jnp.int32)

    fwd = jax.jit(regression_forward)
    pred = fwd(packed, input_ids, attention_mask)
    jax.block_until_ready(pred)
    assert pred.shape == (B,) and pred.dtype == DTYPE, (pred.shape, pred.dtype)

    denorm = jax.jit(predict_denormalized)(packed, input_ids, attention_mask)
    jax.block_until_ready(denorm)

    print("KERNEL_OK")
</pallas_src>

<mosaic_0001>
module attributes {stable_mosaic.version = 11 : i64} {
  func.func @_fused_forward_kernel(%arg0: memref<16x1xi32, #tpu.memory_space<vmem>>, %arg1: memref<368x128xbf16, #tpu.memory_space<vmem>>, %arg2: memref<176x128xbf16, #tpu.memory_space<vmem>>, %arg3: memref<48x32xf32, #tpu.memory_space<vmem>>, %arg4: memref<1x1xf32, #tpu.memory_space<smem>>, %arg5: memref<16x1xbf16, #tpu.memory_space<vmem>>) attributes {dimension_semantics = [], scalar_prefetch = 0 : i64, scratch_operands = 0 : i64, tpu.core_type = #tpu.core_type<tc>} {
    %c0 = arith.constant 0 : index
    %c0_0 = arith.constant 0 : index
    %0 = vector.load %arg2[%c0, %c0_0] : memref<176x128xbf16, #tpu.memory_space<vmem>>, vector<128x32xbf16>
    %c128 = arith.constant 128 : index
    %c0_1 = arith.constant 0 : index
    %1 = vector.load %arg2[%c128, %c0_1] : memref<176x128xbf16, #tpu.memory_space<vmem>>, vector<32x32xbf16>
    %c160 = arith.constant 160 : index
    %c0_2 = arith.constant 0 : index
    %2 = vector.load %arg2[%c160, %c0_2] : memref<176x128xbf16, #tpu.memory_space<vmem>>, vector<1x32xbf16>
    %c168 = arith.constant 168 : index
    %c0_3 = arith.constant 0 : index
    %3 = vector.load %arg2[%c168, %c0_3] : memref<176x128xbf16, #tpu.memory_space<vmem>>, vector<1x32xbf16>
    %4 = arith.extf %3 : vector<1x32xbf16> to vector<1x32xf32>
    %c0_4 = arith.constant 0 : index
    %c0_5 = arith.constant 0 : index
    %5 = vector.load %arg3[%c0_4, %c0_5] : memref<48x32xf32, #tpu.memory_space<vmem>>, vector<16x32xf32>
    %c16 = arith.constant 16 : index
    %c0_6 = arith.constant 0 : index
    %6 = vector.load %arg3[%c16, %c0_6] : memref<48x32xf32, #tpu.memory_space<vmem>>, vector<16x32xf32>
    %c32 = arith.constant 32 : index
    %c0_7 = arith.constant 0 : index
    %7 = vector.load %arg3[%c32, %c0_7] : memref<48x32xf32, #tpu.memory_space<vmem>>, vector<16x16xf32>
    %c0_8 = arith.constant 0 : index
    %c0_9 = arith.constant 0 : index
    %8 = vector.load %arg0[%c0_8, %c0_9] : memref<16x1xi32, #tpu.memory_space<vmem>>, vector<16x1xi32>
    %9 = tpu.iota {dimensions = array<i32: 1>} : vector<16x128xi32>
    %10 = vector.broadcast %8 : vector<16x1xi32> to vector<16x128xi32>
    %11 = arith.cmpi eq, %10, %9 : vector<16x128xi32>
    %12 = arith.extui %11 : vector<16x128xi1> to vector<16x128xi32>
    %13 = arith.sitofp %12 : vector<16x128xi32> to vector<16x128xf32>
    %14 = arith.truncf %13 : vector<16x128xf32> to vector<16x128xbf16>
    %cst = arith.constant dense<0.000000e+00> : vector<16x32xf32>
    %15 = tpu.matmul %14, %0, %cst {dimension_numbers = #tpu.dot_dimension_numbers<[1], [0], [0], [1], [0, 0, 1, 1], [], []>} : vector<16x128xbf16>, vector<128x32xbf16>, vector<16x32xf32> -> vector<16x32xf32>
    %16 = arith.truncf %15 : vector<16x32xf32> to vector<16x32xbf16>
    %c0_10 = arith.constant 0 : index
    %c0_11 = arith.constant 0 : index
    %17 = vector.load %arg1[%c0_10, %c0_11] : memref<368x128xbf16, #tpu.memory_space<vmem>>, vector<1x32xbf16>
    %c8 = arith.constant 8 : index
    %c0_12 = arith.constant 0 : index
    %18 = vector.load %arg1[%c8, %c0_12] : memref<368x128xbf16, #tpu.memory_space<vmem>>, vector<32x96xbf16>
    %c40 = arith.constant 40 : index
    %c0_13 = arith.constant 0 : index
    %19 = vector.load %arg1[%c40, %c0_13] : memref<368x128xbf16, #tpu.memory_space<vmem>>, vector<1x96xbf16>
    %c48 = arith.constant 48 : index
    %c0_14 = arith.constant 0 : index
    %20 = vector.load %arg1[%c48, %c0_14] : memref<368x128xbf16, #tpu.memory_space<vmem>>, vector<32x32xbf16>
    %c80 = arith.constant 80 : index
    %c0_15 = arith.constant 0 : index
    %21 = vector.load %arg1[%c80, %c0_15] : memref<368x128xbf16, #tpu.memory_space<vmem>>, vector<1x32xbf16>
    %c88 = arith.constant 88 : index
    %c0_16 = arith.constant 0 : index
    %22 = vector.load %arg1[%c88, %c0_16] : memref<368x128xbf16, #tpu.memory_space<vmem>>, vector<32x128xbf16>
    %c120 = arith.constant 120 : index
    %c0_17 = arith.constant 0 : index
    %23 = vector.load %arg1[%c120, %c0_17] : memref<368x128xbf16, #tpu.memory_space<vmem>>, vector<64x32xbf16>
    %24 = arith.extf %16 : vector<16x32xbf16> to vector<16x32xf32>
    %25 = arith.mulf %24, %24 : vector<16x32xf32>
    %cst_18 = arith.constant dense<0.000000e+00> : vector<16xf32>
    %26 = vector.multi_reduction <add>, %25, %cst_18 [1] : vector<16x32xf32> to vector<16xf32>
    %27 = vector.shape_cast %26 : vector<16xf32> to vector<16x1xf32>
    %cst_19 = arith.constant 3.200000e+01 : f32
    %28 = vector.broadcast %cst_19 : f32 to vector<16x1xf32>
    %29 = arith.divf %27, %28 : vector<16x1xf32>
    %cst_20 = arith.constant 9.99999997E-7 : f32
    %30 = vector.broadcast %cst_20 : f32 to vector<16x1xf32>
    %31 = arith.addf %29, %30 : vector<16x1xf32>
    %32 = math.rsqrt %31 : vector<16x1xf32>
    %33 = vector.broadcast %32 : vector<16x1xf32> to vector<16x32xf32>
    %34 = arith.mulf %24, %33 : vector<16x32xf32>
    %35 = arith.extf %17 : vector<1x32xbf16> to vector<1x32xf32>
    %36 = vector.broadcast %35 : vector<1x32xf32> to vector<16x32xf32>
    %37 = arith.mulf %34, %36 : vector<16x32xf32>
    %38 = arith.truncf %37 : vector<16x32xf32> to vector<16x32xbf16>
    %cst_21 = arith.constant dense<0.000000e+00> : vector<16x96xf32>
    %39 = tpu.matmul %38, %18, %cst_21 {dimension_numbers = #tpu.dot_dimension_numbers<[1], [0], [0], [1], [0, 0, 1, 1], [], []>} : vector<16x32xbf16>, vector<32x96xbf16>, vector<16x96xf32> -> vector<16x96xf32>
    %40 = arith.extf %19 : vector<1x96xbf16> to vector<1x96xf32>
    %41 = vector.broadcast %40 : vector<1x96xf32> to vector<16x96xf32>
    %42 = arith.addf %39, %41 : vector<16x96xf32>
    %43 = arith.truncf %42 : vector<16x96xf32> to vector<16x96xbf16>
    %44 = vector.extract_strided_slice %43 {offsets = [0, 0], sizes = [16, 32], strides = [1, 1]} : vector<16x96xbf16> to vector<16x32xbf16>
    %cst_22 = arith.constant dense<0.000000e+00> : vector<16x32xf32>
    %45 = tpu.matmul %44, %1, %cst_22 {dimension_numbers = #tpu.dot_dimension_numbers<[1], [0], [0], [1], [0, 0, 1, 1], [], []>} : vector<16x32xbf16>, vector<32x32xbf16>, vector<16x32xf32> -> vector<16x32xf32>
    %46 = arith.extf %44 : vector<16x32xbf16> to vector<16x32xf32>
    %47 = arith.mulf %46, %5 : vector<16x32xf32>
    %48 = arith.mulf %45, %6 : vector<16x32xf32>
    %49 = arith.addf %47, %48 : vector<16x32xf32>
    %50 = arith.truncf %49 : vector<16x32xf32> to vector<16x32xbf16>
    %51 = vector.extract_strided_slice %43 {offsets = [0, 32], sizes = [16, 32], strides = [1, 1]} : vector<16x96xbf16> to vector<16x32xbf16>
    %cst_23 = arith.constant dense<0.000000e+00> : vector<16x32xf32>
    %52 = tpu.matmul %51, %1, %cst_23 {dimension_numbers = #tpu.dot_dimension_numbers<[1], [0], [0], [1], [0, 0, 1, 1], [], []>} : vector<16x32xbf16>, vector<32x32xbf16>, vector<16x32xf32> -> vector<16x32xf32>
    %53 = arith.extf %51 : vector<16x32xbf16> to vector<16x32xf32>
    %54 = arith.mulf %53, %5 : vector<16x32xf32>
    %55 = arith.mulf %52, %6 : vector<16x32xf32>
    %56 = arith.addf %54, %55 : vector<16x32xf32>
    %57 = arith.truncf %56 : vector<16x32xf32> to vector<16x32xbf16>
    %58 = vector.extract_strided_slice %43 {offsets = [0, 64], sizes = [16, 32], strides = [1, 1]} : vector<16x96xbf16> to vector<16x32xbf16>
    %59 = vector.extract_strided_slice %50 {offsets = [0, 0], sizes = [16, 16], strides = [1, 1]} : vector<16x32xbf16> to vector<16x16xbf16>
    %60 = vector.extract_strided_slice %57 {offsets = [0, 0], sizes = [16, 16], strides = [1, 1]} : vector<16x32xbf16> to vector<16x16xbf16>
    %cst_24 = arith.constant dense<0.000000e+00> : vector<16x16xf32>
    %61 = tpu.matmul %59, %60, %cst_24 {dimension_numbers = #tpu.dot_dimension_numbers<[1], [1], [0], [0], [0, 0, 1, 0], [], []>} : vector<16x16xbf16>, vector<16x16xbf16>, vector<16x16xf32> -> vector<16x16xf32>
    %cst_25 = arith.constant 2.500000e-01 : f32
    %62 = vector.broadcast %cst_25 : f32 to vector<16x16xf32>
    %63 = arith.mulf %61, %62 : vector<16x16xf32>
    %64 = arith.addf %63, %7 : vector<16x16xf32>
    %cst_26 = arith.constant dense<0xFF800000> : vector<16xf32>
    %65 = vector.multi_reduction <maximumf>, %64, %cst_26 [1] : vector<16x16xf32> to vector<16xf32>
    %66 = vector.shape_cast %65 : vector<16xf32> to vector<16x1xf32>
    %67 = vector.broadcast %66 : vector<16x1xf32> to vector<16x16xf32>
    %68 = arith.subf %64, %67 : vector<16x16xf32>
    %69 = math.exp %68 : vector<16x16xf32>
    %cst_27 = arith.constant dense<0.000000e+00> : vector<16xf32>
    %70 = vector.multi_reduction <add>, %69, %cst_27 [1] : vector<16x16xf32> to vector<16xf32>
    %71 = vector.shape_cast %70 : vector<16xf32> to vector<16x1xf32>
    %72 = tpu.reciprocal %71 {approx = true} : vector<16x1xf32> -> vector<16x1xf32>
    %73 = vector.broadcast %72 : vector<16x1xf32> to vector<16x16xf32>
    %74 = arith.mulf %69, %73 : vector<16x16xf32>
    %75 = arith.truncf %74 : vector<16x16xf32> to vector<16x16xbf16>
    %76 = vector.extract_strided_slice %58 {offsets = [0, 0], sizes = [16, 16], strides = [1, 1]} : vector<16x32xbf16> to vector<16x16xbf16>
    %cst_28 = arith.constant dense<0.000000e+00> : vector<16x16xf32>
    %77 = tpu.matmul %75, %76, %cst_28 {dimension_numbers = #tpu.dot_dimension_numbers<[1], [0], [0], [1], [0, 0, 1, 1], [], []>} : vector<16x16xbf16>, vector<16x16xbf16>, vector<16x16xf32> -> vector<16x16xf32>
    %78 = arith.truncf %77 : vector<16x16xf32> to vector<16x16xbf16>
    %79 = vector.extract_strided_slice %50 {offsets = [0, 16], sizes = [16, 16], strides = [1, 1]} : vector<16x32xbf16> to vector<16x16xbf16>
    %80 = vector.extract_strided_slice %57 {offsets = [0, 16], sizes = [16, 16], strides = [1, 1]} : vector<16x32xbf16> to vector<16x16xbf16>
    %cst_29 = arith.constant dense<0.000000e+00> : vector<16x16xf32>
    %81 = tpu.matmul %79, %80, %cst_29 {dimension_numbers = #tpu.dot_dimension_numbers<[1], [1], [0], [0], [0, 0, 1, 0], [], []>} : vector<16x16xbf16>, vector<16x16xbf16>, vector<16x16xf32> -> vector<16x16xf32>
    %cst_30 = arith.constant 2.500000e-01 : f32
    %82 = vector.broadcast %cst_30 : f32 to vector<16x16xf32>
    %83 = arith.mulf %81, %82 : vector<16x16xf32>
    %84 = arith.addf %83, %7 : vector<16x16xf32>
    %cst_31 = arith.constant dense<0xFF800000> : vector<16xf32>
    %85 = vector.multi_reduction <maximumf>, %84, %cst_31 [1] : vector<16x16xf32> to vector<16xf32>
    %86 = vector.shape_cast %85 : vector<16xf32> to vector<16x1xf32>
    %87 = vector.broadcast %86 : vector<16x1xf32> to vector<16x16xf32>
    %88 = arith.subf %84, %87 : vector<16x16xf32>
    %89 = math.exp %88 : vector<16x16xf32>
    %cst_32 = arith.constant dense<0.000000e+00> : vector<16xf32>
    %90 = vector.multi_reduction <add>, %89, %cst_32 [1] : vector<16x16xf32> to vector<16xf32>
    %91 = vector.shape_cast %90 : vector<16xf32> to vector<16x1xf32>
    %92 = tpu.reciprocal %91 {approx = true} : vector<16x1xf32> -> vector<16x1xf32>
    %93 = vector.broadcast %92 : vector<16x1xf32> to vector<16x16xf32>
    %94 = arith.mulf %89, %93 : vector<16x16xf32>
    %95 = arith.truncf %94 : vector<16x16xf32> to vector<16x16xbf16>
    %96 = vector.extract_strided_slice %58 {offsets = [0, 16], sizes = [16, 16], strides = [1, 1]} : vector<16x32xbf16> to vector<16x16xbf16>
    %cst_33 = arith.constant dense<0.000000e+00> : vector<16x16xf32>
    %97 = tpu.matmul %95, %96, %cst_33 {dimension_numbers = #tpu.dot_dimension_numbers<[1], [0], [0], [1], [0, 0, 1, 1], [], []>} : vector<16x16xbf16>, vector<16x16xbf16>, vector<16x16xf32> -> vector<16x16xf32>
    %98 = arith.truncf %97 : vector<16x16xf32> to vector<16x16xbf16>
    %99 = tpu.concatenate %78, %98 in 1 : vector<16x16xbf16>, vector<16x16xbf16> -> vector<16x32xbf16>
    %cst_34 = arith.constant dense<0.000000e+00> : vector<16x32xf32>
    %100 = tpu.matmul %99, %20, %cst_34 {dimension_numbers = #tpu.dot_dimension_numbers<[1], [0], [0], [1], [0, 0, 1, 1], [], []>} : vector<16x32xbf16>, vector<32x32xbf16>, vector<16x32xf32> -> vector<16x32xf32>
    %101 = arith.truncf %100 : vector<16x32xf32> to vector<16x32xbf16>
    %102 = arith.addf %16, %101 : vector<16x32xbf16>
    %103 = arith.extf %102 : vector<16x32xbf16> to vector<16x32xf32>
    %104 = arith.mulf %103, %103 : vector<16x32xf32>
    %cst_35 = arith.constant dense<0.000000e+00> : vector<16xf32>
    %105 = vector.multi_reduction <add>, %104, %cst_35 [1] : vector<16x32xf32> to vector<16xf32>
    %106 = vector.shape_cast %105 : vector<16xf32> to vector<16x1xf32>
    %cst_36 = arith.constant 3.200000e+01 : f32
    %107 = vector.broadcast %cst_36 : f32 to vector<16x1xf32>
    %108 = arith.divf %106, %107 : vector<16x1xf32>
    %cst_37 = arith.constant 9.99999997E-7 : f32
    %109 = vector.broadcast %cst_37 : f32 to vector<16x1xf32>
    %110 = arith.addf %108, %109 : vector<16x1xf32>
    %111 = math.rsqrt %110 : vector<16x1xf32>
    %112 = vector.broadcast %111 : vector<16x1xf32> to vector<16x32xf32>
    %113 = arith.mulf %103, %112 : vector<16x32xf32>
    %114 = arith.extf %21 : vector<1x32xbf16> to vector<1x32xf32>
    %115 = vector.broadcast %114 : vector<1x32xf32> to vector<16x32xf32>
    %116 = arith.mulf %113, %115 : vector<16x32xf32>
    %117 = arith.truncf %116 : vector<16x32xf32> to vector<16x32xbf16>
    %cst_38 = arith.constant dense<0.000000e+00> : vector<16x128xf32>
    %118 = tpu.matmul %117, %22, %cst_38 {dimension_numbers = #tpu.dot_dimension_numbers<[1], [0], [0], [1], [0, 0, 1, 1], [], []>} : vector<16x32xbf16>, vector<32x128xbf16>, vector<16x128xf32> -> vector<16x128xf32>
    %119 = vector.extract_strided_slice %118 {offsets = [0, 0], sizes = [16, 64], strides = [1, 1]} : vector<16x128xf32> to vector<16x64xf32>
    %120 = vector.extract_strided_slice %118 {offsets = [0, 64], sizes = [16, 64], strides = [1, 1]} : vector<16x128xf32> to vector<16x64xf32>
    %121 = arith.negf %119 : vector<16x64xf32>
    %122 = math.exp %121 : vector<16x64xf32>
    %cst_39 = arith.constant 1.000000e+00 : f32
    %123 = vector.broadcast %cst_39 : f32 to vector<16x64xf32>
    %124 = arith.addf %123, %122 : vector<16x64xf32>
    %125 = arith.divf %123, %124 : vector<16x64xf32>
    %126 = arith.mulf %119, %125 : vector<16x64xf32>
    %127 = arith.mulf %126, %120 : vector<16x64xf32>
    %128 = arith.truncf %127 : vector<16x64xf32> to vector<16x64xbf16>
    %cst_40 = arith.constant dense<0.000000e+00> : vector<16x32xf32>
    %129 = tpu.matmul %128, %23, %cst_40 {dimension_numbers = #tpu.dot_dimension_numbers<[1], [0], [0], [1], [0, 0, 1, 1], [], []>} : vector<16x64xbf16>, vector<64x32xbf16>, vector<16x32xf32> -> vector<16x32xf32>
    %130 = arith.truncf %129 : vector<16x32xf32> to vector<16x32xbf16>
    %131 = arith.addf %102, %130 : vector<16x32xbf16>
    %c184 = arith.constant 184 : index
    %c0_41 = arith.constant 0 : index
    %132 = vector.load %arg1[%c184, %c0_41] : memref<368x128xbf16, #tpu.memory_space<vmem>>, vector<1x32xbf16>
    %c192 = arith.constant 192 : index
    %c0_42 = arith.constant 0 : index
    %133 = vector.load %arg1[%c192, %c0_42] : memref<368x128xbf16, #tpu.memory_space<vmem>>, vector<32x96xbf16>
    %c224 = arith.constant 224 : index
    %c0_43 = arith.constant 0 : index
    %134 = vector.load %arg1[%c224, %c0_43] : memref<368x128xbf16, #tpu.memory_space<vmem>>, vector<1x96xbf16>
    %c232 = arith.constant 232 : index
    %c0_44 = arith.constant 0 : index
    %135 = vector.load %arg1[%c232, %c0_44] : memref<368x128xbf16, #tpu.memory_space<vmem>>, vector<32x32xbf16>
    %c264 = arith.constant 264 : index
    %c0_45 = arith.constant 0 : index
    %136 = vector.load %arg1[%c264, %c0_45] : memref<368x128xbf16, #tpu.memory_space<vmem>>, vector<1x32xbf16>
    %c272 = arith.constant 272 : index
    %c0_46 = arith.constant 0 : index
    %137 = vector.load %arg1[%c272, %c0_46] : memref<368x128xbf16, #tpu.memory_space<vmem>>, vector<32x128xbf16>
    %c304 = arith.constant 304 : index
    %c0_47 = arith.constant 0 : index
    %138 = vector.load %arg1[%c304, %c0_47] : memref<368x128xbf16, #tpu.memory_space<vmem>>, vector<64x32xbf16>
    %139 = arith.extf %131 : vector<16x32xbf16> to vector<16x32xf32>
    %140 = arith.mulf %139, %139 : vector<16x32xf32>
    %cst_48 = arith.constant dense<0.000000e+00> : vector<16xf32>
    %141 = vector.multi_reduction <add>, %140, %cst_48 [1] : vector<16x32xf32> to vector<16xf32>
    %142 = vector.shape_cast %141 : vector<16xf32> to vector<16x1xf32>
    %cst_49 = arith.constant 3.200000e+01 : f32
    %143 = vector.broadcast %cst_49 : f32 to vector<16x1xf32>
    %144 = arith.divf %142, %143 : vector<16x1xf32>
    %cst_50 = arith.constant 9.99999997E-7 : f32
    %145 = vector.broadcast %cst_50 : f32 to vector<16x1xf32>
    %146 = arith.addf %144, %145 : vector<16x1xf32>
    %147 = math.rsqrt %146 : vector<16x1xf32>
    %148 = vector.broadcast %147 : vector<16x1xf32> to vector<16x32xf32>
    %149 = arith.mulf %139, %148 : vector<16x32xf32>
    %150 = arith.extf %132 : vector<1x32xbf16> to vector<1x32xf32>
    %151 = vector.broadcast %150 : vector<1x32xf32> to vector<16x32xf32>
    %152 = arith.mulf %149, %151 : vector<16x32xf32>
    %153 = arith.truncf %152 : vector<16x32xf32> to vector<16x32xbf16>
    %cst_51 = arith.constant dense<0.000000e+00> : vector<16x96xf32>
    %154 = tpu.matmul %153, %133, %cst_51 {dimension_numbers = #tpu.dot_dimension_numbers<[1], [0], [0], [1], [0, 0, 1, 1], [], []>} : vector<16x32xbf16>, vector<32x96xbf16>, vector<16x96xf32> -> vector<16x96xf32>
    %155 = arith.extf %134 : vector<1x96xbf16> to vector<1x96xf32>
    %156 = vector.broadcast %155 : vector<1x96xf32> to vector<16x96xf32>
    %157 = arith.addf %154, %156 : vector<16x96xf32>
    %158 = arith.truncf %157 : vector<16x96xf32> to vector<16x96xbf16>
    %159 = vector.extract_strided_slice %158 {offsets = [0, 0], sizes = [16, 32], strides = [1, 1]} : vector<16x96xbf16> to vector<16x32xbf16>
    %cst_52 = arith.constant dense<0.000000e+00> : vector<16x32xf32>
    %160 = tpu.matmul %159, %1, %cst_52 {dimension_numbers = #tpu.dot_dimension_numbers<[1], [0], [0], [1], [0, 0, 1, 1], [], []>} : vector<16x32xbf16>, vector<32x32xbf16>, vector<16x32xf32> -> vector<16x32xf32>
    %161 = arith.extf %159 : vector<16x32xbf16> to vector<16x32xf32>
    %162 = arith.mulf %161, %5 : vector<16x32xf32>
    %163 = arith.mulf %160, %6 : vector<16x32xf32>
    %164 = arith.addf %162, %163 : vector<16x32xf32>
    %165 = arith.truncf %164 : vector<16x32xf32> to vector<16x32xbf16>
    %166 = vector.extract_strided_slice %158 {offsets = [0, 32], sizes = [16, 32], strides = [1, 1]} : vector<16x96xbf16> to vector<16x32xbf16>
    %cst_53 = arith.constant dense<0.000000e+00> : vector<16x32xf32>
    %167 = tpu.matmul %166, %1, %cst_53 {dimension_numbers = #tpu.dot_dimension_numbers<[1], [0], [0], [1], [0, 0, 1, 1], [], []>} : vector<16x32xbf16>, vector<32x32xbf16>, vector<16x32xf32> -> vector<16x32xf32>
    %168 = arith.extf %166 : vector<16x32xbf16> to vector<16x32xf32>
    %169 = arith.mulf %168, %5 : vector<16x32xf32>
    %170 = arith.mulf %167, %6 : vector<16x32xf32>
    %171 = arith.addf %169, %170 : vector<16x32xf32>
    %172 = arith.truncf %171 : vector<16x32xf32> to vector<16x32xbf16>
    %173 = vector.extract_strided_slice %158 {offsets = [0, 64], sizes = [16, 32], strides = [1, 1]} : vector<16x96xbf16> to vector<16x32xbf16>
    %174 = vector.extract_strided_slice %165 {offsets = [0, 0], sizes = [16, 16], strides = [1, 1]} : vector<16x32xbf16> to vector<16x16xbf16>
    %175 = vector.extract_strided_slice %172 {offsets = [0, 0], sizes = [16, 16], strides = [1, 1]} : vector<16x32xbf16> to vector<16x16xbf16>
    %cst_54 = arith.constant dense<0.000000e+00> : vector<16x16xf32>
    %176 = tpu.matmul %174, %175, %cst_54 {dimension_numbers = #tpu.dot_dimension_numbers<[1], [1], [0], [0], [0, 0, 1, 0], [], []>} : vector<16x16xbf16>, vector<16x16xbf16>, vector<16x16xf32> -> vector<16x16xf32>
    %cst_55 = arith.constant 2.500000e-01 : f32
    %177 = vector.broadcast %cst_55 : f32 to vector<16x16xf32>
    %178 = arith.mulf %176, %177 : vector<16x16xf32>
    %179 = arith.addf %178, %7 : vector<16x16xf32>
    %cst_56 = arith.constant dense<0xFF800000> : vector<16xf32>
    %180 = vector.multi_reduction <maximumf>, %179, %cst_56 [1] : vector<16x16xf32> to vector<16xf32>
    %181 = vector.shape_cast %180 : vector<16xf32> to vector<16x1xf32>
    %182 = vector.broadcast %181 : vector<16x1xf32> to vector<16x16xf32>
    %183 = arith.subf %179, %182 : vector<16x16xf32>
    %184 = math.exp %183 : vector<16x16xf32>
    %cst_57 = arith.constant dense<0.000000e+00> : vector<16xf32>
    %185 = vector.multi_reduction <add>, %184, %cst_57 [1] : vector<16x16xf32> to vector<16xf32>
    %186 = vector.shape_cast %185 : vector<16xf32> to vector<16x1xf32>
    %187 = tpu.reciprocal %186 {approx = true} : vector<16x1xf32> -> vector<16x1xf32>
    %188 = vector.broadcast %187 : vector<16x1xf32> to vector<16x16xf32>
    %189 = arith.mulf %184, %188 : vector<16x16xf32>
    %190 = arith.truncf %189 : vector<16x16xf32> to vector<16x16xbf16>
    %191 = vector.extract_strided_slice %173 {offsets = [0, 0], sizes = [16, 16], strides = [1, 1]} : vector<16x32xbf16> to vector<16x16xbf16>
    %cst_58 = arith.constant dense<0.000000e+00> : vector<16x16xf32>
    %192 = tpu.matmul %190, %191, %cst_58 {dimension_numbers = #tpu.dot_dimension_numbers<[1], [0], [0], [1], [0, 0, 1, 1], [], []>} : vector<16x16xbf16>, vector<16x16xbf16>, vector<16x16xf32> -> vector<16x16xf32>
    %193 = arith.truncf %192 : vector<16x16xf32> to vector<16x16xbf16>
    %194 = vector.extract_strided_slice %165 {offsets = [0, 16], sizes = [16, 16], strides = [1, 1]} : vector<16x32xbf16> to vector<16x16xbf16>
    %195 = vector.extract_strided_slice %172 {offsets = [0, 16], sizes = [16, 16], strides = [1, 1]} : vector<16x32xbf16> to vector<16x16xbf16>
    %cst_59 = arith.constant dense<0.000000e+00> : vector<16x16xf32>
    %196 = tpu.matmul %194, %195, %cst_59 {dimension_numbers = #tpu.dot_dimension_numbers<[1], [1], [0], [0], [0, 0, 1, 0], [], []>} : vector<16x16xbf16>, vector<16x16xbf16>, vector<16x16xf32> -> vector<16x16xf32>
    %cst_60 = arith.constant 2.500000e-01 : f32
    %197 = vector.broadcast %cst_60 : f32 to vector<16x16xf32>
    %198 = arith.mulf %196, %197 : vector<16x16xf32>
    %199 = arith.addf %198, %7 : vector<16x16xf32>
    %cst_61 = arith.constant dense<0xFF800000> : vector<16xf32>
    %200 = vector.multi_reduction <maximumf>, %199, %cst_61 [1] : vector<16x16xf32> to vector<16xf32>
    %201 = vector.shape_cast %200 : vector<16xf32> to vector<16x1xf32>
    %202 = vector.broadcast %201 : vector<16x1xf32> to vector<16x16xf32>
    %203 = arith.subf %199, %202 : vector<16x16xf32>
    %204 = math.exp %203 : vector<16x16xf32>
    %cst_62 = arith.constant dense<0.000000e+00> : vector<16xf32>
    %205 = vector.multi_reduction <add>, %204, %cst_62 [1] : vector<16x16xf32> to vector<16xf32>
    %206 = vector.shape_cast %205 : vector<16xf32> to vector<16x1xf32>
    %207 = tpu.reciprocal %206 {approx = true} : vector<16x1xf32> -> vector<16x1xf32>
    %208 = vector.broadcast %207 : vector<16x1xf32> to vector<16x16xf32>
    %209 = arith.mulf %204, %208 : vector<16x16xf32>
    %210 = arith.truncf %209 : vector<16x16xf32> to vector<16x16xbf16>
    %211 = vector.extract_strided_slice %173 {offsets = [0, 16], sizes = [16, 16], strides = [1, 1]} : vector<16x32xbf16> to vector<16x16xbf16>
    %cst_63 = arith.constant dense<0.000000e+00> : vector<16x16xf32>
    %212 = tpu.matmul %210, %211, %cst_63 {dimension_numbers = #tpu.dot_dimension_numbers<[1], [0], [0], [1], [0, 0, 1, 1], [], []>} : vector<16x16xbf16>, vector<16x16xbf16>, vector<16x16xf32> -> vector<16x16xf32>
    %213 = arith.truncf %212 : vector<16x16xf32> to vector<16x16xbf16>
    %214 = tpu.concatenate %193, %213 in 1 : vector<16x16xbf16>, vector<16x16xbf16> -> vector<16x32xbf16>
    %cst_64 = arith.constant dense<0.000000e+00> : vector<16x32xf32>
    %215 = tpu.matmul %214, %135, %cst_64 {dimension_numbers = #tpu.dot_dimension_numbers<[1], [0], [0], [1], [0, 0, 1, 1], [], []>} : vector<16x32xbf16>, vector<32x32xbf16>, vector<16x32xf32> -> vector<16x32xf32>
    %216 = arith.truncf %215 : vector<16x32xf32> to vector<16x32xbf16>
    %217 = arith.addf %131, %216 : vector<16x32xbf16>
    %218 = arith.extf %217 : vector<16x32xbf16> to vector<16x32xf32>
    %219 = arith.mulf %218, %218 : vector<16x32xf32>
    %cst_65 = arith.constant dense<0.000000e+00> : vector<16xf32>
    %220 = vector.multi_reduction <add>, %219, %cst_65 [1] : vector<16x32xf32> to vector<16xf32>
    %221 = vector.shape_cast %220 : vector<16xf32> to vector<16x1xf32>
    %cst_66 = arith.constant 3.200000e+01 : f32
    %222 = vector.broadcast %cst_66 : f32 to vector<16x1xf32>
    %223 = arith.divf %221, %222 : vector<16x1xf32>
    %cst_67 = arith.constant 9.99999997E-7 : f32
    %224 = vector.broadcast %cst_67 : f32 to vector<16x1xf32>
    %225 = arith.addf %223, %224 : vector<16x1xf32>
    %226 = math.rsqrt %225 : vector<16x1xf32>
    %227 = vector.broadcast %226 : vector<16x1xf32> to vector<16x32xf32>
    %228 = arith.mulf %218, %227 : vector<16x32xf32>
    %229 = arith.extf %136 : vector<1x32xbf16> to vector<1x32xf32>
    %230 = vector.broadcast %229 : vector<1x32xf32> to vector<16x32xf32>
    %231 = arith.mulf %228, %230 : vector<16x32xf32>
    %232 = arith.truncf %231 : vector<16x32xf32> to vector<16x32xbf16>
    %cst_68 = arith.constant dense<0.000000e+00> : vector<16x128xf32>
    %233 = tpu.matmul %232, %137, %cst_68 {dimension_numbers = #tpu.dot_dimension_numbers<[1], [0], [0], [1], [0, 0, 1, 1], [], []>} : vector<16x32xbf16>, vector<32x128xbf16>, vector<16x128xf32> -> vector<16x128xf32>
    %234 = vector.extract_strided_slice %233 {offsets = [0, 0], sizes = [16, 64], strides = [1, 1]} : vector<16x128xf32> to vector<16x64xf32>
    %235 = vector.extract_strided_slice %233 {offsets = [0, 64], sizes = [16, 64], strides = [1, 1]} : vector<16x128xf32> to vector<16x64xf32>
    %236 = arith.negf %234 : vector<16x64xf32>
    %237 = math.exp %236 : vector<16x64xf32>
    %cst_69 = arith.constant 1.000000e+00 : f32
    %238 = vector.broadcast %cst_69 : f32 to vector<16x64xf32>
    %239 = arith.addf %238, %237 : vector<16x64xf32>
    %240 = arith.divf %238, %239 : vector<16x64xf32>
    %241 = arith.mulf %234, %240 : vector<16x64xf32>
    %242 = arith.mulf %241, %235 : vector<16x64xf32>
    %243 = arith.truncf %242 : vector<16x64xf32> to vector<16x64xbf16>
    %cst_70 = arith.constant dense<0.000000e+00> : vector<16x32xf32>
    %244 = tpu.matmul %243, %138, %cst_70 {dimension_numbers = #tpu.dot_dimension_numbers<[1], [0], [0], [1], [0, 0, 1, 1], [], []>} : vector<16x64xbf16>, vector<64x32xbf16>, vector<16x32xf32> -> vector<16x32xf32>
    %245 = arith.truncf %244 : vector<16x32xf32> to vector<16x32xbf16>
    %246 = arith.addf %217, %245 : vector<16x32xbf16>
    %247 = arith.extf %246 : vector<16x32xbf16> to vector<16x32xf32>
    %248 = arith.mulf %247, %247 : vector<16x32xf32>
    %cst_71 = arith.constant dense<0.000000e+00> : vector<16xf32>
    %249 = vector.multi_reduction <add>, %248, %cst_71 [1] : vector<16x32xf32> to vector<16xf32>
    %250 = vector.shape_cast %249 : vector<16xf32> to vector<16x1xf32>
    %cst_72 = arith.constant 3.200000e+01 : f32
    %251 = vector.broadcast %cst_72 : f32 to vector<16x1xf32>
    %252 = arith.divf %250, %251 : vector<16x1xf32>
    %cst_73 = arith.constant 9.99999997E-7 : f32
    %253 = vector.broadcast %cst_73 : f32 to vector<16x1xf32>
    %254 = arith.addf %252, %253 : vector<16x1xf32>
    %255 = math.rsqrt %254 : vector<16x1xf32>
    %256 = vector.broadcast %255 : vector<16x1xf32> to vector<16x32xf32>
    %257 = arith.mulf %247, %256 : vector<16x32xf32>
    %258 = arith.extf %2 : vector<1x32xbf16> to vector<1x32xf32>
    %259 = vector.broadcast %258 : vector<1x32xf32> to vector<16x32xf32>
    %260 = arith.mulf %257, %259 : vector<16x32xf32>
    %261 = arith.truncf %260 : vector<16x32xf32> to vector<16x32xbf16>
    %262 = arith.extf %261 : vector<16x32xbf16> to vector<16x32xf32>
    %263 = vector.broadcast %4 : vector<1x32xf32> to vector<16x32xf32>
    %264 = arith.mulf %262, %263 : vector<16x32xf32>
    %cst_74 = arith.constant dense<0.000000e+00> : vector<16xf32>
    %265 = vector.multi_reduction <add>, %264, %cst_74 [1] : vector<16x32xf32> to vector<16xf32>
    %266 = vector.shape_cast %265 : vector<16xf32> to vector<16x1xf32>
    %c0_75 = arith.constant 0 : index
    %c0_76 = arith.constant 0 : index
    %267 = memref.load %arg4[%c0_75, %c0_76] : memref<1x1xf32, #tpu.memory_space<smem>>
    %268 = vector.broadcast %267 : f32 to vector<16x1xf32>
    %269 = arith.addf %266, %268 : vector<16x1xf32>
    %270 = arith.truncf %269 : vector<16x1xf32> to vector<16x1xbf16>
    %c0_77 = arith.constant 0 : index
    %c0_78 = arith.constant 0 : index
    %271 = vector.load %arg5[%c0_77, %c0_78] : memref<16x1xbf16, #tpu.memory_space<vmem>>, vector<16x1xbf16>
    tpu.vector_store %arg5[%c0_77, %c0_78], %270 {strides = array<i32>} : memref<16x1xbf16, #tpu.memory_space<vmem>>, vector<16x1xbf16>,
    return
  }
}

</mosaic_0001>

<bundles_post_ra>
// kernel: tile.13
= control target key start
LH: loop header
LB: loop body
LE: loop exit
PB: predicated region body
PF: predicated region fallthrough
CT: control target
= control target key end

     0   :  { %s154_s0 = inlined_call_operand.vmem [shape: f32[8,16], index: 0, kind: input, shape index: {}]   ;;  %s155_s1 = inlined_call_operand.vmem [shape: f32[2,8,2,16], index: 1, kind: output, shape index: {}]  }
   0x1   :  { %v4_v0 = vld [vmem:[%s154_s0] ss:$0 sm:$0xff]  ;;  %v51_v1 = vld [vmem:[%s154_s0 + $0x1] ss:$0 sm:$0xff]  ;;  %v54_v2 = vld [vmem:[%s154_s0 + $0x2] ss:$0 sm:$0xff] }
   0x2   :  { %5 = vst [vmem:[%s155_s1] sm:$0x3] %v4_v0  ;;  %v57_v3 = vld [vmem:[%s154_s0 + $0x3] ss:$0 sm:$0xff]  ;;  %v60_v4 = vld [vmem:[%s154_s0 + $0x4] ss:$0 sm:$0xff] }
   0x3   :  { %50 = vst [vmem:[%s155_s1 + $0x10] sm:$0x3] %v4_v0  ;;  %v63_v5 = vld [vmem:[%s154_s0 + $0x5] ss:$0 sm:$0xff]  ;;  %v66_v6 = vld [vmem:[%s154_s0 + $0x6] ss:$0 sm:$0xff] }
   0x4   :  { %52 = vst [vmem:[%s155_s1 + $0x2] sm:$0x3] %v51_v1  ;;  %v69_v7 = vld [vmem:[%s154_s0 + $0x7] ss:$0 sm:$0xff] }
   0x5   :  { %53 = vst [vmem:[%s155_s1 + $0x12] sm:$0x3] %v51_v1 }
   0x6   :  { %55 = vst [vmem:[%s155_s1 + $0x4] sm:$0x3] %v54_v2 }
   0x7   :  { %56 = vst [vmem:[%s155_s1 + $0x14] sm:$0x3] %v54_v2 }
   0x8   :  { %58 = vst [vmem:[%s155_s1 + $0x6] sm:$0x3] %v57_v3 }
   0x9   :  { %59 = vst [vmem:[%s155_s1 + $0x16] sm:$0x3] %v57_v3 }
   0xa   :  { %61 = vst [vmem:[%s155_s1 + $0x8] sm:$0x3] %v60_v4 }
   0xb   :  { %62 = vst [vmem:[%s155_s1 + $0x18] sm:$0x3] %v60_v4 }
   0xc   :  { %64 = vst [vmem:[%s155_s1 + $0xa] sm:$0x3] %v63_v5 }
   0xd   :  { %65 = vst [vmem:[%s155_s1 + $0x1a] sm:$0x3] %v63_v5 }
   0xe   :  { %67 = vst [vmem:[%s155_s1 + $0xc] sm:$0x3] %v66_v6 }
   0xf   :  { %68 = vst [vmem:[%s155_s1 + $0x1c] sm:$0x3] %v66_v6 }
  0x10   :  { %70 = vst [vmem:[%s155_s1 + $0xe] sm:$0x3] %v69_v7 }
  0x11   :  { %71 = vst [vmem:[%s155_s1 + $0x1e] sm:$0x3] %v69_v7 }

// kernel: tile.14
= control target key start
LH: loop header
LB: loop body
LE: loop exit
PB: predicated region body
PF: predicated region fallthrough
CT: control target
= control target key end

     0   :  { %vm68_vm0 = vcmask 1047556   ;;  %vm70_vm1 = vcmask 130048   ;;  %vm89_vm2 = vcmask 261248   ;;  %s195_s0 = inlined_call_operand.vmem [shape: f32[2,8,2,16], index: 0, kind: input, shape index: {}]   ;;  %s196_s1 = inlined_call_operand.vmem [shape: f32[16,32], index: 1, kind: output, shape index: {}]  }
   0x1   :  { %v110_v0 = vld [vmem:[%s195_s0 + $0xe] sm:$0x3]  ;;  %v111_v1 = vld [vmem:[%s195_s0 + $0xc] sm:$0x3]  ;;  %v112_v2 = vld [vmem:[%s195_s0 + $0xa] sm:$0x3] }
   0x2   :  { %39 = vst [vmem:[#allocation0 + $0x38] sm:$0x3] %v110_v0  ;;  %v113_v3 = vld [vmem:[%s195_s0 + $0x8] sm:$0x3]  ;;  %v114_v4 = vld [vmem:[%s195_s0 + $0x6] sm:$0x3] }
   0x3   :  { %43 = vst [vmem:[#allocation0 + $0x30] sm:$0x3] %v111_v1  ;;  %v115_v5 = vld [vmem:[%s195_s0 + $0x4] sm:$0x3]  ;;  %v116_v6 = vld [vmem:[%s195_s0 + $0x2] sm:$0x3] }
   0x4   :  { %47 = vst [vmem:[#allocation0 + $0x28] sm:$0x3] %v112_v2  ;;  %v64_v7 = vld [vmem:[%s195_s0] sm:$0x3]  ;;  %v102_v8 = vld [vmem:[%s195_s0 + $0x1e] sm:$0x3] }
   0x5   :  { %51 = vst [vmem:[#allocation0 + $0x20] sm:$0x3] %v113_v3  ;;  %v103_v9 = vld [vmem:[%s195_s0 + $0x1c] sm:$0x3]  ;;  %v104_v10 = vld [vmem:[%s195_s0 + $0x1a] sm:$0x3] }
   0x6   :  { %55 = vst [vmem:[#allocation0 + $0x18] sm:$0x3] %v114_v4  ;;  %v105_v11 = vld [vmem:[%s195_s0 + $0x18] sm:$0x3]  ;;  %v106_v12 = vld [vmem:[%s195_s0 + $0x16] sm:$0x3] }
   0x7   :  { %59 = vst [vmem:[#allocation0 + $0x10] sm:$0x3] %v115_v5  ;;  %v107_v13 = vld [vmem:[%s195_s0 + $0x14] sm:$0x3]  ;;  %v108_v14 = vld [vmem:[%s195_s0 + $0x12] sm:$0x3] }
   0x8   :  { %63 = vst [vmem:[#allocation0 + $0x8] sm:$0x3] %v116_v6  ;;  %v109_v15 = vld [vmem:[%s195_s0 + $0x10] sm:$0x3]  ;;  %s120_s0 = smov 16  }
   0x9   :  { %65 = vst [vmem:[#allocation0] sm:$0x3] %v64_v7 }
   0xa   :  { %7 = vst [vmem:[#allocation0 + $0x78] sm:$0x3] %v102_v8 }
   0xb   :  { %11 = vst [vmem:[#allocation0 + $0x70] sm:$0x3] %v103_v9 }
   0xc   :  { %15 = vst [vmem:[#allocation0 + $0x68] sm:$0x3] %v104_v10  ;;  %v84_v16 = vld [vmem:[#allocation0 + $0x1] ss:$8 sm:$0xf0]  }
   0xd   :  { %19 = vst [vmem:[#allocation0 + $0x60] sm:$0x3] %v105_v11  ;;  %v67_v23 = vld [vmem:[#allocation0] ss:$8 sm:$0xf0]  }
   0xe   :  { %23 = vst [vmem:[#allocation0 + $0x58] sm:$0x3] %v106_v12 }
   0xf   :  { %27 = vst [vmem:[#allocation0 + $0x50] sm:$0x3] %v107_v13 }
  0x10   :  { %v82_v17 = vld [vmem:[#allocation0 + $0x1] ss:$8 sm:$0xf]   ;;  %31 = vst [vmem:[#allocation0 + $0x48] sm:$0x3] %v108_v14 }
  0x11   :  { %v86_v18 = vsel %vm68_vm0, %v84_v16, %v82_v17  ;;  %35 = vst [vmem:[#allocation0 + $0x40] sm:$0x3] %v109_v15  ;;  %v66_v22 = vld [vmem:[#allocation0] ss:$8 sm:$0xf]  }
  0x12   :  { %87 = vrot.lane.b32.xlu0 %v86_v18, %s120_s0  ;;  %v69_v24 = vsel %vm68_vm0, %v67_v23, %v66_v22 }
  0x13   :  { %71 = vst.msk [vmem:[%s196_s1] sm:$0xff] %vm70_vm1, %v69_v24  }
  0x14   :  { %v94_v19 = vld [vmem:[#allocation0 + $0x41] ss:$8 sm:$0xf0]   ;;  %v75_v26 = vld [vmem:[#allocation0 + $0x40] ss:$8 sm:$0xf0]  }
  0x18   :  { %v92_v20 = vld [vmem:[#allocation0 + $0x41] ss:$8 sm:$0xf]   ;;  %v73_v25 = vld [vmem:[#allocation0 + $0x40] ss:$8 sm:$0xf]  }
  0x19   :  { %v96_v21 = vsel %vm68_vm0, %v94_v19, %v92_v20  ;;  %v77_v27 = vsel %vm68_vm0, %v75_v26, %v73_v25 }
  0x1a   :  { %97 = vrot.lane.b32.xlu0 %v96_v21, %s120_s0  ;;  %117 = vst.msk [vmem:[%s196_s1 + $0x8] sm:$0xff] %vm70_vm1, %v77_v27  }
  0x84   :  { %v88_v28 = vpop.permute.xlu0 %87  }
  0x85   :  { %90 = vst.msk [vmem:[%s196_s1] sm:$0xff] %vm89_vm2, %v88_v28  }
  0x8c   :  { %v98_v29 = vpop.permute.xlu0 %97  }
  0x8d   :  { %118 = vst.msk [vmem:[%s196_s1 + $0x8] sm:$0xff] %vm89_vm2, %v98_v29  }

// kernel: regression_forward.1
= control target key start
LH: loop header
LB: loop body
LE: loop exit
PB: predicated region body
PF: predicated region fallthrough
CT: control target
= control target key end

     0   :  { %v1565_v0 = vmov 0   ;;  %v53_v12 = vlaneseq  ;;  %v1566_v15 = vmov 1.0|1.0   ;;  %vm159_vm3 = vcmask 261120   ;;  %s1568_s18 = smov 32   ;;  %s1569_s27 = smov 96   ;;  %s1956_s0 = inlined_call_operand.vmem [shape: s32[16,1], index: 0, kind: input, shape index: {}]   ;;  %s1957_s2 = inlined_call_operand.vmem [shape: bf16[176,128], index: 2, kind: input, shape index: {}]   ;;  %s1958_s1 = inlined_call_operand.vmem [shape: bf16[368,128], index: 1, kind: input, shape index: {}]   ;;  %s1959_s3 = inlined_call_operand.vmem [shape: f32[48,32], index: 3, kind: input, shape index: {}]   ;;  %s1960_s4 = inlined_call_operand.<no memory space> [shape: f32[1,1], index: 4, kind: input, shape index: {}]   ;;  %s1961_s5 = inlined_call_operand.vmem [shape: bf16[16,1], index: 5, kind: output, shape index: {}]  }
   0x1   :  { %1494 = vset.pattern.permute.xlu0 %v1565_v0  ;;  %v51_v1 = vld [vmem:[%s1956_s0] sm:$0xff]  ;;  %v1461_v2 = vld [vmem:[%s1957_s2 + $0x38] sm:$0xff]  ;;  %v1460_v3 = vld [vmem:[%s1957_s2 + $0x30] sm:$0xff]  ;;  %v1567_v26 = vmov 32.0   ;;  %s1571_s9 = smov 80   ;;  %vm336_vm11 = vcmask 130048  }
   0x2   :  { %56 = vperm.xlu0 %1494, %v51_v1   ;;  %116 = vmatpush.bf16.msra.mxu0 %v1461_v2  ;;  %v52_v4 = vld [vmem:[%s1956_s0 + $0x8] sm:$0xff]  ;;  %v1458_v6 = vld [vmem:[%s1957_s2 + $0x20] sm:$0xff]  ;;  %v1457_v7 = vld [vmem:[%s1957_s2 + $0x18] sm:$0xff]  ;;  %v54_v13 = vand.u32 127, %v53_v12  ;;  %1495 = vrcp.f32 %v1567_v26  ;;  %s1570_s0 = smov 112   ;;  %s1572_s14 = smov 48  }
   0x3   :  { %v1459_v5 = vld [vmem:[%s1957_s2 + $0x28] sm:$0xff]  ;;  %v1456_v8 = vld [vmem:[%s1957_s2 + $0x10] sm:$0xff]  ;;  %v1454_v10 = vld [vmem:[%s1957_s2] sm:$0xff]  ;;  %s1574_s20 = smov 16  }
   0x4   :  { %v1455_v9 = vld [vmem:[%s1957_s2 + $0x8] sm:$0xff]  ;;  %v132_v51 = vld [vmem:[%s1958_s1] sm:$0x1]  ;;  %v137_v2 = vld [vmem:[%s1958_s1 + $0x14] sm:$0x1] }
   0x5   :  { %v1465_v32 = vld [vmem:[%s1958_s1 + $0xc] sm:$0xff]  ;;  %v1464_v34 = vld [vmem:[%s1958_s1 + $0x4] sm:$0xff]  ;;  %v199_v53 = vunpack.c.l.bf16 %v132_v51 }
   0x6   :  { %117 = vmatpush.bf16.msra.mxu0 %v1460_v3  ;;  %227 = vmatpush.bf16.msra.mxu1 %v1465_v32  ;;  %v1657_v38 = vld [vmem:[%s1959_s3 + $0x8] sm:$0xff]  ;;  %v1678_v1 = vld [vmem:[%s1957_s2 + $0x40] sm:$0xff]  ;;  %v204_v3 = vunpack.c.l.bf16 %v137_v2 }
   0x7   :  { %v200_v58 = vperm.slane %v199_v53, 0  ;;  %v1671_v0 = vld [vmem:[%s1957_s2 + $0x48] sm:$0xff] }
   0x8   :  { %v1496_v27 = vpop.eup %1495  ;;  %263 = vmatpush.bf16.msra.mxu2 %v1671_v0  ;;  %292 = vmatpush.bf16.msra.mxu3 %v1671_v0 }
   0x9   :  { %v167_v28 = vmul.f32 32.0, %v1496_v27  ;;  %vm171_vm4 = vweird.f32 %v1496_v27 }
   0xa   :  { %59 = vperm.xlu0 %1494, %v52_v4   ;;  %118 = vmatpush.bf16.msra.mxu0 %v1459_v5  ;;  %v205_v5 = vperm.slane %v204_v3, 0 }
   0xb   :  { %v168_v29 = vsub.f32 1.0, %v167_v28  ;;  %228 = vmatpush.bf16.msra.mxu1 %v1464_v34 }
   0xc   :  { %264 = vmatpush.bf16.msra.mxu2 %v1678_v1  ;;  %293 = vmatpush.bf16.msra.mxu3 %v1678_v1 }
   0xd   :  { %v169_v30 = vmul.f32 %v1496_v27, %v168_v29 }
   0xe   :  { %119 = vmatpush.bf16.msra.mxu0 %v1458_v6 }
   0xf   :  { %v170_v31 = vadd.f32 %v1496_v27, %v169_v30 }
  0x11   :  { %v1648_v33 = vsel %vm171_vm4, %v1496_v27, %v170_v31 }
  0x12   :  { %120 = vmatpush.bf16.msra.mxu0 %v1457_v7  ;;  %304 = vrot.lane.b32.xlu0 %v1657_v38, %s1568_s18 }
  0x16   :  { %121 = vmatpush.bf16.msra.mxu0 %v1456_v8 }
  0x1a   :  { %122 = vmatpush.bf16.msra.mxu0 %v1455_v9 }
  0x1e   :  { %123 = vmatpush.bf16.msra.mxu0 %v1454_v10 }
  0x74   :  { %v57_v11 = vpop.permute.xlu0 %56 }
  0x75   :  { %vm61_vm0 = vcmp.eq.s32.totalorder %v57_v11, %v54_v13 }
  0x7c   :  { %v60_v14 = vpop.permute.xlu0 %59 }
  0x7d   :  { %vm62_vm1 = vcmp.eq.s32.totalorder %v60_v14, %v54_v13  ;;  %v1694_v14 = vld [vmem:[%s1959_s3] sm:$0xff] }
  0x7e   :  { %vm1340_vm2 = vmpackc.low %vm62_vm1, %vm61_vm0 }
  0x7f   :  { %1341 = vmatmul.msk.bf16.vlgmr.msra.gmra.mxu0 %vm1340_vm2, %v1566_v15 }
  0xfc   :  { %v125_v16 = vpop.f32.mrf.mxu0 }
  0xfd   :  { %v130_v17 = vpack.c.bf16 %v125_v16, %v125_v16 }
  0xff   :  { %v1635_v18 = vunpack.c.l.bf16 %v130_v17  ;;  %v1702_v17 = vld [vmem:[%s1959_s3 + $0x18] sm:$0xff] }
 0x101   :  { %v157_v19 = vmul.f32 %v1635_v18, %v1635_v18 }
 0x103   :  { %v160_v20 = vsel %vm159_vm3, %v157_v19, 0.0 }
 0x104   :  { %161 = vadd.xlane.f32.xlu1 %v160_v20  ;;  %v127_v21 = vpop.f32.mrf.mxu0 }
 0x105   :  { %v131_v22 = vpack.c.bf16 %v127_v21, %v127_v21  ;;  %v1707_v21 = vld [vmem:[%s1959_s3 + $0x10] sm:$0xff] }
 0x107   :  { %v1640_v23 = vunpack.c.l.bf16 %v131_v22 }
 0x109   :  { %v158_v24 = vmul.f32 %v1640_v23, %v1640_v23 }
 0x10b   :  { %v163_v25 = vsel %vm159_vm3, %v158_v24, 0.0 }
 0x10c   :  { %164 = vadd.xlane.f32.xlu1 %v163_v25 }
 0x177   :  { %v162_v35 = vpop.xlane.xlu1 %161 }
 0x178   :  { %v173_v36 = vmul.f32 %v1648_v33, %v162_v35 }
 0x17a   :  { %v175_v37 = vadd.f32 1e-06, %v173_v36 }
 0x17c   :  { %1497 = vrsqrt.f32 %v175_v37  ;;  %vm183_vm6 = vweird.f32 %v175_v37 }
 0x17f   :  { %v165_v39 = vpop.xlane.xlu1 %164 }
 0x180   :  { %v174_v40 = vmul.f32 %v1648_v33, %v165_v39 }
 0x182   :  { %v1498_v41 = vpop.eup %1497  ;;  %v176_v42 = vadd.f32 1e-06, %v174_v40 }
 0x183   :  { %v178_v43 = vmul.f32 %v1498_v41, %v175_v37  ;;  %vm184_vm5 = vweird.f32 %v1498_v41 }
 0x184   :  { %1499 = vrsqrt.f32 %v176_v42  ;;  %vm185_vm7 = vmor %vm183_vm6, %vm184_vm5  ;;  %vm193_vm9 = vweird.f32 %v176_v42 }
 0x185   :  { %v179_v44 = vmul.f32 %v1498_v41, %v178_v43 }
 0x187   :  { %v180_v45 = vmul.f32 0.5, %v179_v44 }
 0x189   :  { %v181_v46 = vsub.f32 1.5, %v180_v45 }
 0x18a   :  { %v1500_v47 = vpop.eup %1499 }
 0x18b   :  { %v188_v48 = vmul.f32 %v1500_v47, %v176_v42  ;;  %v182_v49 = vmul.f32 %v1498_v41, %v181_v46  ;;  %vm194_vm8 = vweird.f32 %v1500_v47  ;;  %v1720_v42 = vpop.permute.xlu0 %304 }
 0x18c   :  { %vm195_vm10 = vmor %vm193_vm9, %vm194_vm8 }
 0x18d   :  { %v189_v50 = vmul.f32 %v1500_v47, %v188_v48  ;;  %v186_v54 = vsel %vm185_vm7, %v1498_v41, %v182_v49 }
 0x18e   :  { %v197_v57 = vmul.f32 %v186_v54, %v1635_v18 }
 0x18f   :  { %v190_v52 = vmul.f32 0.5, %v189_v50 }
 0x190   :  { %v201_v61 = vmul.f32 %v200_v58, %v197_v57 }
 0x191   :  { %v191_v55 = vsub.f32 1.5, %v190_v52 }
 0x193   :  { %v192_v56 = vmul.f32 %v1500_v47, %v191_v55 }
 0x195   :  { %v196_v59 = vsel %vm195_vm10, %v1500_v47, %v192_v56 }
 0x196   :  { %v198_v60 = vmul.f32 %v196_v59, %v1640_v23 }
 0x198   :  { %v202_v62 = vmul.f32 %v200_v58, %v198_v60  ;;  %v1733_v60 = vld [vmem:[%s1959_s3 + $0x20] sm:$0xff] }
 0x19a   :  { %v203_v63 = vpack.c.bf16 %v202_v62, %v201_v61 }
 0x19c   :  { %1350 = vmatmul.msk.bf16.vlgmr.msra.gmra.mxu1 %vm159_vm3, %v203_v63 }
 0x219   :  { %v230_v4 = vpop.f32.mrf.mxu1 }
 0x21a   :  { %v231_v6 = vadd.f32 %v230_v4, %v205_v5 }
 0x21c   :  { %v235_v8 = vpack.c.bf16 %v231_v6, %v231_v6 }
 0x21e   :  { %v239_v11 = vunpack.c.l.b16 %v235_v8  ;;  %v271_v24 = vunpack.c.l.bf16 %v235_v8 }
 0x220   :  { %v273_v29 = vmul.f32 %v271_v24, %v1694_v14 }
 0x221   :  { %v232_v7 = vpop.f32.mrf.mxu1 }
 0x222   :  { %v233_v9 = vadd.f32 %v232_v7, %v205_v5  ;;  %v1742_v7 = vld [vmem:[%s1959_s3 + $0x28] sm:$0xff]  ;;  %s1573_s3 = smov 64  }
 0x224   :  { %v236_v10 = vpack.c.bf16 %v233_v9, %v233_v9 }
 0x226   :  { %v240_v12 = vunpack.c.l.b16 %v236_v10  ;;  %v272_v20 = vunpack.c.l.bf16 %v236_v10 }
 0x228   :  { %v1685_v13 = vpack.c.b16 %v240_v12, %v239_v11  ;;  %v274_v28 = vmul.f32 %v272_v20, %v1657_v38  ;;  %v309_v44 = vmul.f32 %v1720_v42, %v272_v20 }
 0x22a   :  { %281 = vrot.lane.b32.xlu2 %v1685_v13, %s1569_s27  ;;  %1359 = vmatmul.msk.bf16.vlgmr.msra.gmra.mxu2 %vm159_vm3, %v1685_v13 }
 0x232   :  { %302 = vrot.lane.b32.xlu2 %v1694_v14, %s1568_s18 }
 0x284   :  { %v282_v15 = vpop.permute.xlu2 %281 }
 0x285   :  { %1360 = vmatmul.msk.bf16.vlgmr.msra.gmra.mxu3 %vm159_vm3, %v282_v15 }
 0x28c   :  { %v1718_v41 = vpop.permute.xlu2 %302 }
 0x28d   :  { %v308_v46 = vmul.f32 %v1718_v41, %v271_v24 }
 0x2ad   :  { %v266_v16 = vpop.f32.mrf.mxu2 }
 0x2ae   :  { %v275_v27 = vmul.f32 %v266_v16, %v1707_v21 }
 0x2b0   :  { %v277_v31 = vadd.f32 %v275_v27, %v273_v29 }
 0x2b2   :  { %v279_v36 = vpack.c.bf16 %v277_v31, %v277_v31 }
 0x2b4   :  { %v326_v39 = vunpack.c.l.b16 %v279_v36 }
 0x2b5   :  { %v268_v19 = vpop.f32.mrf.mxu2 }
 0x2b6   :  { %v276_v25 = vmul.f32 %v268_v19, %v1702_v17 }
 0x2b8   :  { %v278_v30 = vadd.f32 %v276_v25, %v274_v28 }
 0x2ba   :  { %v280_v34 = vpack.c.bf16 %v278_v30, %v278_v30 }
 0x2bc   :  { %v327_v37 = vunpack.c.l.b16 %v280_v34 }
 0x2be   :  { %v328_v40 = vpack.c.b16 %v327_v37, %v326_v39 }
 0x308   :  { %v295_v22 = vpop.f32.mrf.mxu3 }
 0x309   :  { %v310_v26 = vmul.f32 %v295_v22, %v1707_v21 }
 0x30b   :  { %314 = vrot.lane.b32.xlu1 %v310_v26, %s1568_s18 }
 0x310   :  { %v297_v32 = vpop.f32.mrf.mxu3 }
 0x311   :  { %v311_v35 = vmul.f32 %v297_v32, %v1702_v17 }
 0x313   :  { %316 = vrot.lane.b32.xlu2 %v311_v35, %s1568_s18 }
 0x31b   :  { %406 = vrot.lane.b32.xlu2 %v328_v40, %s1570_s0 }
 0x36d   :  { %v317_v43 = vpop.permute.xlu2 %316 }
 0x36e   :  { %v321_v45 = vadd.f32 %v317_v43, %v309_v44 }
 0x370   :  { %v323_v48 = vpack.c.bf16 %v321_v45, %v321_v45 }
 0x372   :  { %v332_v51 = vunpack.c.l.b16 %v323_v48 }
 0x375   :  { %v407_v56 = vpop.permute.xlu2 %406 }
 0x37d   :  { %v315_v47 = vpop.permute.xlu1 %314 }
 0x37e   :  { %v320_v49 = vadd.f32 %v315_v47, %v308_v46 }
 0x380   :  { %v322_v50 = vpack.c.bf16 %v320_v49, %v320_v49 }
 0x382   :  { %v331_v52 = vunpack.c.l.b16 %v322_v50 }
 0x384   :  { %v333_v53 = vpack.c.b16 %v332_v51, %v331_v52 }
 0x386   :  { %408 = vrot.lane.b32.xlu0 %v333_v53, %s1571_s9 }
 0x38e   :  { %334 = vrot.lane.b32.xlu0 %v333_v53, %s1569_s27 }
 0x3f8   :  { %v409_v54 = vpop.permute.xlu0 %408 }
 0x3f9   :  { %v414_v55 = vsel %vm336_vm11, %v409_v54, 0 }
 0x3fa   :  { %423 = vmatpush.bf16.xpose.msrb.mxu3 %v414_v55 }
 0x400   :  { %v335_v57 = vpop.permute.xlu0 %334 }
 0x401   :  { %1363 = vmatmul.msk.bf16.vlgmr.msrb.gmra.mxu3 %vm336_vm11, %v407_v56  ;;  %v341_v58 = vsel %vm336_vm11, %v335_v57, 0 }
 0x402   :  { %350 = vmatpush.bf16.xpose.msrb.mxu1 %v341_v58 }
 0x409   :  { %1361 = vmatmul.msk.bf16.vlgmr.msrb.gmra.mxu1 %vm336_vm11, %v328_v40 }
 0x484   :  { %v425_v59 = vpop.f32.mrf.mxu3 }
 0x485   :  { %v430_v61 = vmul.f32 0.25, %v425_v59 }
 0x486   :  { %v352_v62 = vpop.f32.mrf.mxu1 }
 0x487   :  { %v357_v63 = vmul.f32 0.25, %v352_v62  ;;  %v432_v2 = vadd.f32 %v430_v61, %v1733_v60  ;;  %v1467_v61 = vld [vmem:[%s1958_s1 + $0x20] sm:$0xff]  ;;  %v1466_v62 = vld [vmem:[%s1958_s1 + $0x18] sm:$0xff] }
 0x489   :  { %v434_v3 = vsel %vm336_vm11, %v432_v2, -inf  ;;  %v359_v4 = vadd.f32 %v357_v63, %v1733_v60 }
 0x48a   :  { %435 = vmax.xlane.f32.xlu2 %v434_v3 }
 0x48b   :  { %v361_v5 = vsel %vm336_vm11, %v359_v4, -inf }
 0x48c   :  { %v427_v6 = vpop.f32.mrf.mxu3  ;;  %362 = vmax.xlane.f32.xlu1 %v361_v5 }
 0x48d   :  { %v431_v8 = vmul.f32 0.25, %v427_v6 }
 0x48e   :  { %v354_v9 = vpop.f32.mrf.mxu1 }
 0x48f   :  { %v358_v10 = vmul.f32 0.25, %v354_v9  ;;  %v433_v11 = vadd.f32 %v431_v8, %v1742_v7 }
 0x491   :  { %v437_v12 = vsel %vm336_vm11, %v433_v11, -inf  ;;  %v360_v15 = vadd.f32 %v358_v10, %v1742_v7 }
 0x492   :  { %438 = vmax.xlane.f32.xlu0 %v437_v12 }
 0x493   :  { %v364_v16 = vsel %vm336_vm11, %v360_v15, -inf }
 0x494   :  { %365 = vmax.xlane.f32.xlu2 %v364_v16 }
 0x4a5   :  { %457 = vrot.lane.b32.xlu1 %v1685_v13, %s1572_s14 }
 0x4fd   :  { %v436_v19 = vpop.xlane.xlu2 %435 }
 0x4fe   :  { %v440_v20 = vsub.f32 %v432_v2, %v436_v19 }
 0x4ff   :  { %v363_v22 = vpop.xlane.xlu1 %362 }
 0x500   :  { %v442_v24 = vmul.f32 1.442695, %v440_v20  ;;  %v367_v25 = vsub.f32 %v359_v4, %v363_v22 }
 0x502   :  { %1501 = vpow2.f32 %v442_v24  ;;  %v369_v26 = vmul.f32 1.442695, %v367_v25 }
 0x504   :  { %1503 = vpow2.f32 %v369_v26 }
 0x505   :  { %v439_v27 = vpop.xlane.xlu0 %438 }
 0x506   :  { %v441_v28 = vsub.f32 %v433_v11, %v439_v27 }
 0x507   :  { %v366_v29 = vpop.xlane.xlu2 %365 }
 0x508   :  { %v1502_v30 = vpop.eup %1501  ;;  %v444_v31 = vmul.f32 1.442695, %v441_v28  ;;  %v368_v32 = vsub.f32 %v360_v15, %v366_v29 }
 0x509   :  { %v446_v34 = vsel %vm336_vm11, %v1502_v30, 0.0 }
 0x50a   :  { %1505 = vpow2.f32 %v444_v31  ;;  %447 = vadd.xlane.f32.xlu2 %v446_v34  ;;  %v371_v35 = vmul.f32 1.442695, %v368_v32  ;;  %v1504_v36 = vpop.eup %1503 }
 0x50b   :  { %v373_v39 = vsel %vm336_vm11, %v1504_v36, 0.0 }
 0x50c   :  { %1507 = vpow2.f32 %v371_v35 }
 0x510   :  { %v1506_v37 = vpop.eup %1505 }
 0x511   :  { %v449_v40 = vsel %vm336_vm11, %v1506_v37, 0.0 }
 0x512   :  { %374 = vadd.xlane.f32.xlu2 %v373_v39  ;;  %450 = vadd.xlane.f32.xlu0 %v449_v40  ;;  %v1508_v43 = vpop.eup %1507 }
 0x513   :  { %v376_v45 = vsel %vm336_vm11, %v1508_v43, 0.0 }
 0x517   :  { %v458_v44 = vpop.permute.xlu1 %457 }
 0x518   :  { %470 = vmatpush.bf16.msra.mxu1 %v458_v44 }
 0x51a   :  { %377 = vadd.xlane.f32.xlu0 %v376_v45 }
 0x52a   :  { %384 = vrot.lane.b32.xlu2 %v1685_v13, %s1573_s3 }
 0x57d   :  { %v448_v46 = vpop.xlane.xlu2 %447 }
 0x57e   :  { %1509 = vrcp.f32 %v448_v46 }
 0x584   :  { %v1510_v49 = vpop.eup %1509 }
 0x585   :  { %v375_v47 = vpop.xlane.xlu2 %374  ;;  %v451_v48 = vpop.xlane.xlu0 %450  ;;  %v454_v53 = vmul.f32 %v1510_v49, %v1502_v30 }
 0x586   :  { %1511 = vrcp.f32 %v451_v48 }
 0x587   :  { %1513 = vrcp.f32 %v375_v47 }
 0x58c   :  { %v1512_v50 = vpop.eup %1511 }
 0x58d   :  { %v385_v51 = vpop.permute.xlu2 %384  ;;  %v378_v52 = vpop.xlane.xlu0 %377  ;;  %v455_v54 = vmul.f32 %v1512_v50, %v1506_v37 }
 0x58e   :  { %1515 = vrcp.f32 %v378_v52  ;;  %397 = vmatpush.bf16.msrb.mxu2 %v385_v51  ;;  %v1514_v56 = vpop.eup %1513 }
 0x58f   :  { %v456_v55 = vpack.c.bf16 %v455_v54, %v454_v53  ;;  %v381_v13 = vmul.f32 %v1514_v56, %v1504_v36 }
 0x591   :  { %1364 = vmatmul.msk.bf16.vlgmr.msra.gmra.mxu1 %vm336_vm11, %v456_v55 }
 0x592   :  { %514 = vmatpush.bf16.msra.mxu2 %v1467_v61 }
 0x594   :  { %v1516_v57 = vpop.eup %1515 }
 0x595   :  { %v382_v58 = vmul.f32 %v1516_v57, %v1508_v43  ;;  %v1469_v43 = vld [vmem:[%s1958_s1 + $0x34] sm:$0xff]  ;;  %v142_v57 = vld [vmem:[%s1958_s1 + $0x28] sm:$0x1] }
 0x596   :  { %515 = vmatpush.bf16.msra.mxu2 %v1466_v62  ;;  %592 = vmatpush.bf16.msra.mxu3 %v1469_v43 }
 0x597   :  { %v383_v59 = vpack.c.bf16 %v382_v58, %v381_v13  ;;  %v566_v58 = vunpack.c.l.bf16 %v142_v57 }
 0x599   :  { %1362 = vmatmul.msk.bf16.vlgmr.msrb.gmra.mxu2 %vm336_vm11, %v383_v59 }
 0x59a   :  { %812 = vmatpush.bf16.msrb.mxu2 %v1671_v0 }
 0x59e   :  { %813 = vmatpush.bf16.msrb.mxu2 %v1678_v1 }
 0x60e   :  { %v472_v63 = vpop.f32.mrf.mxu1 }
 0x60f   :  { %v477_v2 = vpack.c.bf16 %v472_v63, %v472_v63  ;;  %v567_v63 = vperm.slane %v566_v58, 0 }
 0x611   :  { %v486_v5 = vunpack.c.l.b16 %v477_v2 }
 0x616   :  { %v474_v3 = vpop.f32.mrf.mxu1 }
 0x617   :  { %v478_v4 = vpack.c.bf16 %v474_v3, %v474_v3 }
 0x619   :  { %v487_v6 = vunpack.c.l.b16 %v478_v4 }
 0x61b   :  { %v488_v8 = vpack.c.b16 %v487_v6, %v486_v5 }
 0x61c   :  { %v399_v9 = vpop.f32.mrf.mxu2 }
 0x61d   :  { %489 = vrot.lane.b32.xlu0 %v488_v8, %s1574_s20  ;;  %v404_v12 = vpack.c.bf16 %v399_v9, %v399_v9  ;;  %v1473_v9 = vld [vmem:[%s1958_s1 + $0x54] sm:$0xff] }
 0x61e   :  { %683 = vmatpush.bf16.msrb.mxu0 %v1473_v9 }
 0x61f   :  { %v481_v16 = vunpack.c.l.b16 %v404_v12 }
 0x624   :  { %v401_v10 = vpop.f32.mrf.mxu2 }
 0x625   :  { %v405_v11 = vpack.c.bf16 %v401_v10, %v401_v10 }
 0x627   :  { %v482_v15 = vunpack.c.l.b16 %v405_v11 }
 0x629   :  { %v483_v19 = vpack.c.b16 %v482_v15, %v481_v16 }
 0x68f   :  { %v490_v20 = vpop.permute.xlu0 %489 }
 0x690   :  { %v493_v22 = vsel %vm336_vm11, %v483_v19, %v490_v20  ;;  %v1472_v19 = vld [vmem:[%s1958_s1 + $0x4c] sm:$0xff] }
 0x691   :  { %1373 = vmatmul.msk.bf16.vlgmr.msra.gmra.mxu2 %vm159_vm3, %v493_v22  ;;  %684 = vmatpush.bf16.msrb.mxu0 %v1472_v19  ;;  %v1471_v22 = vld [vmem:[%s1958_s1 + $0x44] sm:$0xff] }
 0x695   :  { %685 = vmatpush.bf16.msrb.mxu0 %v1471_v22 }
 0x714   :  { %v517_v24 = vpop.f32.mrf.mxu2 }
 0x715   :  { %v522_v25 = vpack.c.bf16 %v517_v24, %v517_v24 }
 0x717   :  { %v524_v26 = vunpack.c.l.bf16 %v522_v25 }
 0x719   :  { %v526_v27 = vadd.f32 %v524_v26, %v1635_v18  ;;  %v1470_v26 = vld [vmem:[%s1958_s1 + $0x3c] sm:$0xff] }
 0x71a   :  { %686 = vmatpush.bf16.msrb.mxu0 %v1470_v26 }
 0x71b   :  { %v528_v28 = vpack.c.bf16 %v526_v27, %v526_v27 }
 0x71c   :  { %v519_v29 = vpop.f32.mrf.mxu2 }
 0x71d   :  { %v1770_v30 = vunpack.c.l.bf16 %v528_v28  ;;  %v523_v31 = vpack.c.bf16 %v519_v29, %v519_v29 }
 0x71f   :  { %v525_v32 = vunpack.c.l.bf16 %v523_v31  ;;  %v532_v34 = vmul.f32 %v1770_v30, %v1770_v30 }
 0x721   :  { %v527_v35 = vadd.f32 %v525_v32, %v1640_v23  ;;  %v534_v36 = vsel %vm159_vm3, %v532_v34, 0.0  ;;  %v1468_v23 = vld [vmem:[%s1958_s1 + $0x2c] sm:$0xff] }
 0x722   :  { %535 = vadd.xlane.f32.xlu1 %v534_v36  ;;  %593 = vmatpush.bf16.msra.mxu3 %v1468_v23 }
 0x723   :  { %v529_v37 = vpack.c.bf16 %v527_v35, %v527_v35 }
 0x725   :  { %v1776_v39 = vunpack.c.l.bf16 %v529_v37 }
 0x726   :  { %841 = vmatpush.bf16.msrb.mxu3 %v1671_v0 }
 0x727   :  { %v533_v18 = vmul.f32 %v1776_v39, %v1776_v39 }
 0x729   :  { %v537_v40 = vsel %vm159_vm3, %v533_v18, 0.0 }
 0x72a   :  { %538 = vadd.xlane.f32.xlu0 %v537_v40  ;;  %842 = vmatpush.bf16.msrb.mxu3 %v1678_v1 }
 0x795   :  { %v536_v44 = vpop.xlane.xlu1 %535 }
 0x796   :  { %v540_v45 = vmul.f32 %v536_v44, %v1648_v33 }
 0x798   :  { %v542_v46 = vadd.f32 1e-06, %v540_v45 }
 0x79a   :  { %1517 = vrsqrt.f32 %v542_v46  ;;  %vm550_vm13 = vweird.f32 %v542_v46 }
 0x79d   :  { %v539_v47 = vpop.xlane.xlu0 %538 }
 0x79e   :  { %v541_v48 = vmul.f32 %v539_v47, %v1648_v33 }
 0x7a0   :  { %v1518_v49 = vpop.eup %1517  ;;  %v543_v50 = vadd.f32 1e-06, %v541_v48 }
 0x7a1   :  { %v545_v51 = vmul.f32 %v1518_v49, %v542_v46  ;;  %vm551_vm12 = vweird.f32 %v1518_v49 }
 0x7a2   :  { %1519 = vrsqrt.f32 %v543_v50  ;;  %vm552_vm14 = vmor %vm550_vm13, %vm551_vm12  ;;  %vm560_vm0 = vweird.f32 %v543_v50  ;;  %vm675_vm12 = vcmask 523264  }
 0x7a3   :  { %v546_v52 = vmul.f32 %v1518_v49, %v545_v51 }
 0x7a5   :  { %v547_v53 = vmul.f32 0.5, %v546_v52 }
 0x7a7   :  { %v548_v54 = vsub.f32 1.5, %v547_v53 }
 0x7a8   :  { %v1520_v55 = vpop.eup %1519 }
 0x7a9   :  { %v555_v56 = vmul.f32 %v1520_v55, %v543_v50  ;;  %v549_v0 = vmul.f32 %v1518_v49, %v548_v54  ;;  %vm561_vm15 = vweird.f32 %v1520_v55 }
 0x7aa   :  { %vm562_vm1 = vmor %vm560_vm0, %vm561_vm15 }
 0x7ab   :  { %v556_v13 = vmul.f32 %v1520_v55, %v555_v56  ;;  %v553_v59 = vsel %vm552_vm14, %v1518_v49, %v549_v0 }
 0x7ac   :  { %v564_v2 = vmul.f32 %v553_v59, %v1770_v30 }
 0x7ad   :  { %v557_v1 = vmul.f32 0.5, %v556_v13 }
 0x7ae   :  { %v568_v5 = vmul.f32 %v567_v63, %v564_v2 }
 0x7af   :  { %v558_v61 = vsub.f32 1.5, %v557_v1 }
 0x7b1   :  { %v559_v62 = vmul.f32 %v1520_v55, %v558_v61 }
 0x7b3   :  { %v563_v3 = vsel %vm562_vm1, %v1520_v55, %v559_v62 }
 0x7b4   :  { %v565_v4 = vmul.f32 %v563_v3, %v1776_v39 }
 0x7b6   :  { %v569_v6 = vmul.f32 %v567_v63, %v565_v4 }
 0x7b8   :  { %v570_v8 = vpack.c.bf16 %v569_v6, %v568_v5 }
 0x7ba   :  { %1382 = vmatmul.msk.bf16.vlgmr.msra.gmra.mxu3 %vm159_vm3, %v570_v8 }
 0x83d   :  { %v595_v10 = vpop.f32.mrf.mxu3 }
 0x83e   :  { %642 = vrot.lane.b32.xlu2 %v595_v10, %s1573_s3  ;;  %v1383_v12 = vmul.f32 -1.442695, %v595_v10 }
 0x840   :  { %1521 = vpow2.f32 %v1383_v12 }
 0x845   :  { %v597_v11 = vpop.f32.mrf.mxu3 }
 0x846   :  { %644 = vrot.lane.b32.xlu2 %v597_v11, %s1573_s3  ;;  %v1384_v15 = vmul.f32 -1.442695, %v597_v11  ;;  %v1522_v16 = vpop.eup %1521 }
 0x847   :  { %v606_v24 = vadd.f32 1.0, %v1522_v16 }
 0x848   :  { %1523 = vpow2.f32 %v1384_v15 }
 0x849   :  { %1525 = vrcp.f32 %v606_v24  ;;  %vm613_vm5 = vweird.f32 %v606_v24  ;;  %v619_v40 = vand.u32 2147483648, %v606_v24  ;;  %v617_v44 = vand.u32 2147483647, %v606_v24 }
 0x84b   :  { %v620_v48 = vor.u32 1.1754944e-38, %v619_v40  ;;  %vm618_vm9 = vcmp.eq.f32.partialorder %v617_v44, 8.507059e+37 }
 0x84e   :  { %v1524_v20 = vpop.eup %1523 }
 0x84f   :  { %v607_v25 = vadd.f32 1.0, %v1524_v20  ;;  %v1526_v27 = vpop.eup %1525 }
 0x850   :  { %v609_v29 = vmul.f32 %v1526_v27, %v606_v24  ;;  %vm614_vm2 = vweird.f32 %v1526_v27 }
 0x851   :  { %1527 = vrcp.f32 %v607_v25  ;;  %v634_v43 = vand.u32 2147483648, %v607_v25  ;;  %vm615_vm6 = vmor %vm613_vm5, %vm614_vm2  ;;  %vm628_vm7 = vweird.f32 %v607_v25  ;;  %v632_v23 = vand.u32 2147483647, %v607_v25 }
 0x852   :  { %v610_v32 = vsub.f32 1.0, %v609_v29 }
 0x853   :  { %v635_v49 = vor.u32 1.1754944e-38, %v634_v43  ;;  %vm633_vm10 = vcmp.eq.f32.partialorder %v632_v23, 8.507059e+37 }
 0x854   :  { %v611_v35 = vmul.f32 %v1526_v27, %v610_v32 }
 0x856   :  { %v612_v37 = vadd.f32 %v1526_v27, %v611_v35 }
 0x857   :  { %v1528_v28 = vpop.eup %1527 }
 0x858   :  { %v624_v31 = vmul.f32 %v1528_v28, %v607_v25  ;;  %vm629_vm4 = vweird.f32 %v1528_v28  ;;  %v616_v46 = vsel %vm615_vm6, %v1526_v27, %v612_v37 }
 0x859   :  { %vm630_vm8 = vmor %vm628_vm7, %vm629_vm4  ;;  %v621_v50 = vsel %vm618_vm9, %v620_v48, %v616_v46 }
 0x85a   :  { %v625_v34 = vsub.f32 1.0, %v624_v31  ;;  %v638_v52 = vmul.f32 %v621_v50, %v595_v10  ;;  %v1475_v10 = vld [vmem:[%s1958_s1 + $0x68] sm:$0xff]  ;;  %v701_v31 = vld [vmem:[%s1958_s1 + $0x5c] sm:$0x1] }
 0x85b   :  { %788 = vmatpush.bf16.msrb.mxu1 %v1475_v10 }
 0x85c   :  { %v626_v36 = vmul.f32 %v1528_v28, %v625_v34 }
 0x85e   :  { %v627_v18 = vadd.f32 %v1528_v28, %v626_v36  ;;  %v760_v36 = vunpack.c.l.bf16 %v701_v31 }
 0x860   :  { %v631_v47 = vsel %vm630_vm8, %v1528_v28, %v627_v18  ;;  %v761_v43 = vperm.slane %v760_v36, 0 }
 0x861   :  { %v636_v51 = vsel %vm633_vm10, %v635_v49, %v631_v47  ;;  %v706_v49 = vld [vmem:[%s1958_s1 + $0x70] sm:$0x1] }
 0x862   :  { %v639_v53 = vmul.f32 %v636_v51, %v597_v11  ;;  %v765_v50 = vunpack.c.l.bf16 %v706_v49 }
 0x898   :  { %v643_v45 = vpop.permute.xlu2 %642 }
 0x899   :  { %v648_v55 = vmul.f32 %v643_v45, %v638_v52  ;;  %v766_v52 = vperm.slane %v765_v50, 0 }
 0x8a0   :  { %v645_v54 = vpop.permute.xlu2 %644 }
 0x8a1   :  { %v649_v56 = vmul.f32 %v645_v54, %v639_v53 }
 0x8a3   :  { %v650_v57 = vpack.c.bf16 %v649_v56, %v648_v55 }
 0x8a5   :  { %1401 = vmatmul.msk.bf16.vlgmr.msrb.gmra.mxu0 %vm675_vm12, %v650_v57 }
 0x922   :  { %v688_v0 = vpop.f32.mrf.mxu0 }
 0x923   :  { %v693_v13 = vpack.c.bf16 %v688_v0, %v688_v0 }
 0x925   :  { %v695_v1 = vunpack.c.l.bf16 %v693_v13 }
 0x927   :  { %v697_v58 = vadd.f32 %v695_v1, %v1770_v30 }
 0x929   :  { %v699_v59 = vpack.c.bf16 %v697_v58, %v697_v58 }
 0x92a   :  { %v690_v61 = vpop.f32.mrf.mxu0 }
 0x92b   :  { %v1813_v62 = vunpack.c.l.bf16 %v699_v59  ;;  %v694_v63 = vpack.c.bf16 %v690_v61, %v690_v61 }
 0x92d   :  { %v696_v2 = vunpack.c.l.bf16 %v694_v63  ;;  %v726_v3 = vmul.f32 %v1813_v62, %v1813_v62 }
 0x92f   :  { %v698_v4 = vadd.f32 %v696_v2, %v1776_v39  ;;  %v728_v5 = vsel %vm159_vm3, %v726_v3, 0.0  ;;  %v1474_v39 = vld [vmem:[%s1958_s1 + $0x60] sm:$0xff] }
 0x930   :  { %729 = vadd.xlane.f32.xlu2 %v728_v5  ;;  %789 = vmatpush.bf16.msrb.mxu1 %v1474_v39 }
 0x931   :  { %v700_v6 = vpack.c.bf16 %v698_v4, %v698_v4 }
 0x933   :  { %v1819_v8 = vunpack.c.l.bf16 %v700_v6 }
 0x935   :  { %v727_v30 = vmul.f32 %v1819_v8, %v1819_v8 }
 0x937   :  { %v731_v9 = vsel %vm159_vm3, %v727_v30, 0.0 }
 0x938   :  { %732 = vadd.xlane.f32.xlu1 %v731_v9 }
 0x9a3   :  { %v730_v11 = vpop.xlane.xlu2 %729 }
 0x9a4   :  { %v734_v12 = vmul.f32 %v730_v11, %v1648_v33 }
 0x9a6   :  { %v736_v15 = vadd.f32 1e-06, %v734_v12 }
 0x9a8   :  { %1529 = vrsqrt.f32 %v736_v15  ;;  %vm744_vm14 = vweird.f32 %v736_v15 }
 0x9ab   :  { %v733_v16 = vpop.xlane.xlu1 %732 }
 0x9ac   :  { %v735_v19 = vmul.f32 %v733_v16, %v1648_v33 }
 0x9ae   :  { %v1530_v20 = vpop.eup %1529  ;;  %v737_v22 = vadd.f32 1e-06, %v735_v19 }
 0x9af   :  { %v739_v24 = vmul.f32 %v1530_v20, %v736_v15  ;;  %vm745_vm13 = vweird.f32 %v1530_v20 }
 0x9b0   :  { %1531 = vrsqrt.f32 %v737_v22  ;;  %vm746_vm15 = vmor %vm744_vm14, %vm745_vm13  ;;  %vm754_vm1 = vweird.f32 %v737_v22 }
 0x9b1   :  { %v740_v25 = vmul.f32 %v1530_v20, %v739_v24 }
 0x9b3   :  { %v741_v26 = vmul.f32 0.5, %v740_v25 }
 0x9b5   :  { %v742_v27 = vsub.f32 1.5, %v741_v26 }
 0x9b6   :  { %v1532_v28 = vpop.eup %1531 }
 0x9b7   :  { %v749_v29 = vmul.f32 %v1532_v28, %v737_v22  ;;  %v743_v32 = vmul.f32 %v1530_v20, %v742_v27  ;;  %vm755_vm0 = vweird.f32 %v1532_v28 }
 0x9b8   :  { %vm756_vm2 = vmor %vm754_vm1, %vm755_vm0 }
 0x9b9   :  { %v750_v34 = vmul.f32 %v1532_v28, %v749_v29  ;;  %v747_v37 = vsel %vm746_vm15, %v1530_v20, %v743_v32 }
 0x9ba   :  { %v758_v44 = vmul.f32 %v747_v37, %v1813_v62 }
 0x9bb   :  { %v751_v35 = vmul.f32 0.5, %v750_v34 }
 0x9bc   :  { %v762_v46 = vmul.f32 %v761_v43, %v758_v44 }
 0x9bd   :  { %v752_v18 = vsub.f32 1.5, %v751_v35 }
 0x9bf   :  { %v753_v40 = vmul.f32 %v1532_v28, %v752_v18 }
 0x9c1   :  { %v757_v23 = vsel %vm756_vm2, %v1532_v28, %v753_v40 }
 0x9c2   :  { %v759_v45 = vmul.f32 %v757_v23, %v1819_v8 }
 0x9c4   :  { %v763_v47 = vmul.f32 %v761_v43, %v759_v45 }
 0x9c6   :  { %v764_v48 = vpack.c.bf16 %v763_v47, %v762_v46 }
 0x9c8   :  { %1410 = vmatmul.msk.bf16.vlgmr.msrb.gmra.mxu1 %vm159_vm3, %v764_v48 }
 0xa45   :  { %v791_v51 = vpop.f32.mrf.mxu1 }
 0xa46   :  { %v792_v53 = vadd.f32 %v791_v51, %v766_v52 }
 0xa48   :  { %v796_v55 = vpack.c.bf16 %v792_v53, %v792_v53 }
 0xa4a   :  { %v800_v0 = vunpack.c.l.b16 %v796_v55  ;;  %v820_v61 = vunpack.c.l.bf16 %v796_v55 }
 0xa4c   :  { %v822_v3 = vmul.f32 %v820_v61, %v1694_v14  ;;  %v849_v25 = vmul.f32 %v820_v61, %v1718_v41 }
 0xa4d   :  { %v793_v54 = vpop.f32.mrf.mxu1 }
 0xa4e   :  { %v794_v56 = vadd.f32 %v793_v54, %v766_v52 }
 0xa50   :  { %v797_v57 = vpack.c.bf16 %v794_v56, %v794_v56 }
 0xa52   :  { %v801_v13 = vunpack.c.l.b16 %v797_v57  ;;  %v821_v2 = vunpack.c.l.bf16 %v797_v57 }
 0xa54   :  { %v1841_v1 = vpack.c.b16 %v801_v13, %v800_v0  ;;  %v823_v6 = vmul.f32 %v821_v2, %v1657_v38  ;;  %v850_v22 = vmul.f32 %v821_v2, %v1720_v42 }
 0xa56   :  { %830 = vrot.lane.b32.xlu1 %v1841_v1, %s1569_s27  ;;  %1411 = vmatmul.msk.bf16.vlgmr.msrb.gmra.mxu2 %vm159_vm3, %v1841_v1 }
 0xac8   :  { %v831_v58 = vpop.permute.xlu1 %830 }
 0xac9   :  { %1412 = vmatmul.msk.bf16.vlgmr.msrb.gmra.mxu3 %vm159_vm3, %v831_v58 }
 0xad9   :  { %v815_v59 = vpop.f32.mrf.mxu2 }
 0xada   :  { %v824_v63 = vmul.f32 %v815_v59, %v1707_v21 }
 0xadc   :  { %v826_v4 = vadd.f32 %v824_v63, %v822_v3 }
 0xade   :  { %v828_v9 = vpack.c.bf16 %v826_v4, %v826_v4 }
 0xae0   :  { %v867_v39 = vunpack.c.l.b16 %v828_v9 }
 0xae1   :  { %v817_v5 = vpop.f32.mrf.mxu2 }
 0xae2   :  { %v825_v30 = vmul.f32 %v817_v5, %v1702_v17 }
 0xae4   :  { %v827_v10 = vadd.f32 %v825_v30, %v823_v6 }
 0xae6   :  { %v829_v11 = vpack.c.bf16 %v827_v10, %v827_v10 }
 0xae8   :  { %v868_v12 = vunpack.c.l.b16 %v829_v11 }
 0xaea   :  { %v869_v15 = vpack.c.b16 %v868_v12, %v867_v39 }
 0xaec   :  { %946 = vrot.lane.b32.xlu1 %v869_v15, %s1570_s0 }
 0xb4c   :  { %v844_v16 = vpop.f32.mrf.mxu3 }
 0xb4d   :  { %v851_v19 = vmul.f32 %v844_v16, %v1707_v21 }
 0xb4f   :  { %855 = vrot.lane.b32.xlu0 %v851_v19, %s1568_s18 }
 0xb54   :  { %v846_v14 = vpop.f32.mrf.mxu3 }
 0xb55   :  { %v852_v20 = vmul.f32 %v846_v14, %v1702_v17 }
 0xb57   :  { %857 = vrot.lane.b32.xlu2 %v852_v20, %s1568_s18 }
 0xb5e   :  { %v947_v35 = vpop.permute.xlu1 %946 }
 0xbb1   :  { %v858_v38 = vpop.permute.xlu2 %857 }
 0xbb2   :  { %v862_v24 = vadd.f32 %v858_v38, %v850_v22 }
 0xbb4   :  { %v864_v27 = vpack.c.bf16 %v862_v24, %v862_v24 }
 0xbb6   :  { %v873_v31 = vunpack.c.l.b16 %v864_v27 }
 0xbc1   :  { %v856_v26 = vpop.permute.xlu0 %855 }
 0xbc2   :  { %v861_v28 = vadd.f32 %v856_v26, %v849_v25 }
 0xbc4   :  { %v863_v29 = vpack.c.bf16 %v861_v28, %v861_v28 }
 0xbc6   :  { %v872_v32 = vunpack.c.l.b16 %v863_v29  ;;  %v1477_v29 = vld [vmem:[%s1958_s1 + $0x7c] sm:$0xff] }
 0xbc8   :  { %v874_v21 = vpack.c.b16 %v873_v31, %v872_v32  ;;  %v1476_v31 = vld [vmem:[%s1958_s1 + $0x74] sm:$0xff] }
 0xbca   :  { %948 = vrot.lane.b32.xlu0 %v874_v21, %s1571_s9 }
 0xbd2   :  { %875 = vrot.lane.b32.xlu0 %v874_v21, %s1569_s27 }
 0xc3c   :  { %v949_v17 = vpop.permute.xlu0 %948 }
 0xc3d   :  { %v954_v34 = vsel %vm336_vm11, %v949_v17, 0 }
 0xc3e   :  { %963 = vmatpush.bf16.xpose.msra.mxu2 %v954_v34 }
 0xc44   :  { %v876_v42 = vpop.permute.xlu0 %875 }
 0xc45   :  { %v881_v36 = vsel %vm336_vm11, %v876_v42, 0  ;;  %1415 = vmatmul.msk.bf16.vlgmr.msra.gmra.mxu2 %vm336_vm11, %v947_v35 }
 0xc46   :  { %890 = vmatpush.bf16.xpose.msra.mxu0 %v881_v36 }
 0xc4d   :  { %1413 = vmatmul.msk.bf16.vlgmr.msra.gmra.mxu0 %vm336_vm11, %v869_v15 }
 0xc4e   :  { %1054 = vmatpush.bf16.msrb.mxu0 %v1477_v29 }
 0xc52   :  { %1055 = vmatpush.bf16.msrb.mxu0 %v1476_v31 }
 0xcc8   :  { %v965_v41 = vpop.f32.mrf.mxu2 }
 0xcc9   :  { %v970_v37 = vmul.f32 0.25, %v965_v41 }
 0xcca   :  { %v892_v18 = vpop.f32.mrf.mxu0 }
 0xccb   :  { %v897_v40 = vmul.f32 0.25, %v892_v18  ;;  %v972_v43 = vadd.f32 %v970_v37, %v1733_v60 }
 0xccd   :  { %v974_v44 = vsel %vm336_vm11, %v972_v43, -inf  ;;  %v899_v23 = vadd.f32 %v897_v40, %v1733_v60 }
 0xcce   :  { %975 = vmax.xlane.f32.xlu1 %v974_v44 }
 0xccf   :  { %v901_v45 = vsel %vm336_vm11, %v899_v23, -inf }
 0xcd0   :  { %v967_v46 = vpop.f32.mrf.mxu2  ;;  %902 = vmax.xlane.f32.xlu2 %v901_v45 }
 0xcd1   :  { %v971_v47 = vmul.f32 0.25, %v967_v46 }
 0xcd2   :  { %v894_v48 = vpop.f32.mrf.mxu0 }
 0xcd3   :  { %v898_v49 = vmul.f32 0.25, %v894_v48  ;;  %v973_v50 = vadd.f32 %v971_v47, %v1742_v7 }
 0xcd5   :  { %v977_v51 = vsel %vm336_vm11, %v973_v50, -inf  ;;  %v900_v52 = vadd.f32 %v898_v49, %v1742_v7 }
 0xcd6   :  { %978 = vmax.xlane.f32.xlu0 %v977_v51 }
 0xcd7   :  { %v904_v53 = vsel %vm336_vm11, %v900_v52, -inf }
 0xcd8   :  { %905 = vmax.xlane.f32.xlu1 %v904_v53 }
 0xce8   :  { %997 = vrot.lane.b32.xlu2 %v1841_v1, %s1572_s14 }
 0xd41   :  { %v976_v60 = vpop.xlane.xlu1 %975 }
 0xd42   :  { %v980_v54 = vsub.f32 %v972_v43, %v976_v60 }
 0xd43   :  { %v903_v55 = vpop.xlane.xlu2 %902 }
 0xd44   :  { %v982_v56 = vmul.f32 1.442695, %v980_v54  ;;  %v907_v57 = vsub.f32 %v899_v23, %v903_v55 }
 0xd46   :  { %1533 = vpow2.f32 %v982_v56  ;;  %v909_v0 = vmul.f32 1.442695, %v907_v57 }
 0xd48   :  { %1535 = vpow2.f32 %v909_v0 }
 0xd49   :  { %v979_v13 = vpop.xlane.xlu0 %978 }
 0xd4a   :  { %v981_v58 = vsub.f32 %v973_v50, %v979_v13 }
 0xd4b   :  { %v998_v59 = vpop.permute.xlu2 %997  ;;  %v906_v61 = vpop.xlane.xlu1 %905 }
 0xd4c   :  { %v1534_v63 = vpop.eup %1533  ;;  %v984_v7 = vmul.f32 1.442695, %v981_v58  ;;  %v908_v2 = vsub.f32 %v900_v52, %v906_v61  ;;  %1010 = vmatpush.bf16.msra.mxu3 %v998_v59  ;;  %v1479_v59 = vld [vmem:[%s1958_s1 + $0x90] sm:$0xff] }
 0xd4d   :  { %v986_v3 = vsel %vm336_vm11, %v1534_v63, 0.0 }
 0xd4e   :  { %1537 = vpow2.f32 %v984_v7  ;;  %987 = vadd.xlane.f32.xlu0 %v986_v3  ;;  %v911_v4 = vmul.f32 1.442695, %v908_v2  ;;  %v1536_v5 = vpop.eup %1535 }
 0xd4f   :  { %v913_v30 = vsel %vm336_vm11, %v1536_v5, 0.0 }
 0xd50   :  { %1539 = vpow2.f32 %v911_v4 }
 0xd54   :  { %v1538_v6 = vpop.eup %1537 }
 0xd55   :  { %v989_v9 = vsel %vm336_vm11, %v1538_v6, 0.0 }
 0xd56   :  { %914 = vadd.xlane.f32.xlu0 %v913_v30  ;;  %990 = vadd.xlane.f32.xlu1 %v989_v9  ;;  %v1540_v10 = vpop.eup %1539 }
 0xd57   :  { %v916_v11 = vsel %vm336_vm11, %v1540_v10, 0.0 }
 0xd5e   :  { %917 = vadd.xlane.f32.xlu1 %v916_v11 }
 0xd6a   :  { %924 = vrot.lane.b32.xlu0 %v1841_v1, %s1573_s3 }
 0xdc1   :  { %v988_v39 = vpop.xlane.xlu0 %987 }
 0xdc2   :  { %1541 = vrcp.f32 %v988_v39 }
 0xdc8   :  { %v1542_v15 = vpop.eup %1541 }
 0xdc9   :  { %v991_v12 = vpop.xlane.xlu1 %990  ;;  %v915_v16 = vpop.xlane.xlu0 %914  ;;  %v994_v20 = vmul.f32 %v1542_v15, %v1534_v63 }
 0xdca   :  { %1543 = vrcp.f32 %v991_v12  ;;  %v711_v12 = vld [vmem:[%s1958_s1 + $0x84] sm:$0x1] }
 0xdd0   :  { %v1544_v19 = vpop.eup %1543 }
 0xdd1   :  { %v918_v14 = vpop.xlane.xlu1 %917  ;;  %v995_v38 = vmul.f32 %v1544_v19, %v1538_v6 }
 0xdd2   :  { %1545 = vrcp.f32 %v918_v14  ;;  %v1106_v14 = vunpack.c.l.bf16 %v711_v12 }
 0xdd3   :  { %1547 = vrcp.f32 %v915_v16  ;;  %v996_v22 = vpack.c.bf16 %v995_v38, %v994_v20 }
 0xdd5   :  { %1416 = vmatmul.msk.bf16.vlgmr.msra.gmra.mxu3 %vm336_vm11, %v996_v22 }
 0xdd8   :  { %v1546_v24 = vpop.eup %1545 }
 0xdd9   :  { %v1548_v25 = vpop.eup %1547  ;;  %v922_v26 = vmul.f32 %v1546_v24, %v1540_v10  ;;  %v1107_v24 = vperm.slane %v1106_v14, 0 }
 0xdda   :  { %v921_v27 = vmul.f32 %v1548_v25, %v1536_v5 }
 0xddc   :  { %v925_v1 = vpop.permute.xlu0 %924  ;;  %v923_v28 = vpack.c.bf16 %v922_v26, %v921_v27 }
 0xddd   :  { %937 = vmatpush.bf16.msra.mxu1 %v925_v1 }
 0xde0   :  { %1414 = vmatmul.msk.bf16.vlgmr.msra.gmra.mxu1 %vm336_vm11, %v923_v28 }
 0xde1   :  { %1132 = vmatpush.bf16.msrb.mxu1 %v1479_v59 }
 0xe58   :  { %v1012_v32 = vpop.f32.mrf.mxu3 }
 0xe59   :  { %v1017_v21 = vpack.c.bf16 %v1012_v32, %v1012_v32  ;;  %v1483_v32 = vld [vmem:[%s1958_s1 + $0xb0] sm:$0xff] }
 0xe5a   :  { %1222 = vmatpush.bf16.msrb.mxu2 %v1483_v32  ;;  %v42_v32 = vld [vmem:[%s1957_s2 + $0x50] sm:$0x1] }
 0xe5b   :  { %v1026_v35 = vunpack.c.l.b16 %v1017_v21 }
 0xe5d   :  { %v939_v41 = vpop.f32.mrf.mxu1 }
 0xe5e   :  { %v944_v40 = vpack.c.bf16 %v939_v41, %v939_v41  ;;  %v1481_v41 = vld [vmem:[%s1958_s1 + $0xa0] sm:$0xff] }
 0xe60   :  { %v1014_v17 = vpop.f32.mrf.mxu3  ;;  %v1021_v44 = vunpack.c.l.b16 %v944_v40  ;;  %v1480_v40 = vld [vmem:[%s1958_s1 + $0x98] sm:$0xff] }
 0xe61   :  { %v1018_v34 = vpack.c.bf16 %v1014_v17, %v1014_v17 }
 0xe63   :  { %v1027_v42 = vunpack.c.l.b16 %v1018_v34 }
 0xe65   :  { %v1028_v36 = vpack.c.b16 %v1027_v42, %v1026_v35  ;;  %v941_v37 = vpop.f32.mrf.mxu1  ;;  %v1482_v42 = vld [vmem:[%s1958_s1 + $0xa8] sm:$0xff] }
 0xe66   :  { %v945_v18 = vpack.c.bf16 %v941_v37, %v941_v37  ;;  %1223 = vmatpush.bf16.msrb.mxu2 %v1482_v42 }
 0xe67   :  { %1029 = vrot.lane.b32.xlu1 %v1028_v36, %s1574_s20 }
 0xe68   :  { %v1022_v43 = vunpack.c.l.b16 %v945_v18 }
 0xe6a   :  { %v1023_v23 = vpack.c.b16 %v1022_v43, %v1021_v44  ;;  %1224 = vmatpush.bf16.msrb.mxu2 %v1481_v41 }
 0xe6e   :  { %1225 = vmatpush.bf16.msrb.mxu2 %v1480_v40 }
 0xed9   :  { %v1030_v45 = vpop.permute.xlu1 %1029 }
 0xeda   :  { %v1033_v46 = vsel %vm336_vm11, %v1023_v23, %v1030_v45 }
 0xedb   :  { %1425 = vmatmul.msk.bf16.vlgmr.msrb.gmra.mxu0 %vm159_vm3, %v1033_v46 }
 0xf58   :  { %v1057_v47 = vpop.f32.mrf.mxu0 }
 0xf59   :  { %v1062_v48 = vpack.c.bf16 %v1057_v47, %v1057_v47 }
 0xf5b   :  { %v1064_v49 = vunpack.c.l.bf16 %v1062_v48 }
 0xf5d   :  { %v1066_v50 = vadd.f32 %v1064_v49, %v1813_v62 }
 0xf5f   :  { %v1068_v51 = vpack.c.bf16 %v1066_v50, %v1066_v50 }
 0xf60   :  { %v1059_v52 = vpop.f32.mrf.mxu0 }
 0xf61   :  { %v1893_v53 = vunpack.c.l.bf16 %v1068_v51  ;;  %v1063_v60 = vpack.c.bf16 %v1059_v52, %v1059_v52 }
 0xf63   :  { %v1065_v54 = vunpack.c.l.bf16 %v1063_v60  ;;  %v1072_v55 = vmul.f32 %v1893_v53, %v1893_v53 }
 0xf65   :  { %v1067_v56 = vadd.f32 %v1065_v54, %v1819_v8  ;;  %v1074_v57 = vsel %vm159_vm3, %v1072_v55, 0.0  ;;  %v1478_v8 = vld [vmem:[%s1958_s1 + $0x88] sm:$0xff] }
 0xf66   :  { %1075 = vadd.xlane.f32.xlu2 %v1074_v57  ;;  %1133 = vmatpush.bf16.msrb.mxu1 %v1478_v8 }
 0xf67   :  { %v1069_v0 = vpack.c.bf16 %v1067_v56, %v1067_v56 }
 0xf69   :  { %v1899_v13 = vunpack.c.l.bf16 %v1069_v0 }
 0xf6b   :  { %v1073_v62 = vmul.f32 %v1899_v13, %v1899_v13 }
 0xf6d   :  { %v1077_v58 = vsel %vm159_vm3, %v1073_v62, 0.0 }
 0xf6e   :  { %1078 = vadd.xlane.f32.xlu0 %v1077_v58 }
 0xfd9   :  { %v1076_v61 = vpop.xlane.xlu2 %1075 }
 0xfda   :  { %v1080_v63 = vmul.f32 %v1076_v61, %v1648_v33 }
 0xfdc   :  { %v1082_v7 = vadd.f32 1e-06, %v1080_v63 }
 0xfde   :  { %1549 = vrsqrt.f32 %v1082_v7  ;;  %vm1090_vm4 = vweird.f32 %v1082_v7 }
 0xfe1   :  { %v1079_v2 = vpop.xlane.xlu0 %1078 }
 0xfe2   :  { %v1081_v3 = vmul.f32 %v1079_v2, %v1648_v33 }
 0xfe4   :  { %v1550_v4 = vpop.eup %1549  ;;  %v1083_v5 = vadd.f32 1e-06, %v1081_v3 }
 0xfe5   :  { %v1085_v6 = vmul.f32 %v1550_v4, %v1082_v7  ;;  %vm1091_vm11 = vweird.f32 %v1550_v4 }
 0xfe6   :  { %1551 = vrsqrt.f32 %v1083_v5  ;;  %vm1092_vm5 = vmor %vm1090_vm4, %vm1091_vm11  ;;  %vm1100_vm7 = vweird.f32 %v1083_v5 }
 0xfe7   :  { %v1086_v30 = vmul.f32 %v1550_v4, %v1085_v6 }
 0xfe9   :  { %v1087_v9 = vmul.f32 0.5, %v1086_v30 }
 0xfeb   :  { %v1088_v10 = vsub.f32 1.5, %v1087_v9 }
 0xfec   :  { %v1552_v11 = vpop.eup %1551 }
 0xfed   :  { %v1095_v39 = vmul.f32 %v1552_v11, %v1083_v5  ;;  %v1089_v15 = vmul.f32 %v1550_v4, %v1088_v10  ;;  %vm1101_vm6 = vweird.f32 %v1552_v11 }
 0xfee   :  { %vm1102_vm8 = vmor %vm1100_vm7, %vm1101_vm6 }
 0xfef   :  { %v1096_v16 = vmul.f32 %v1552_v11, %v1095_v39  ;;  %v1093_v20 = vsel %vm1092_vm5, %v1550_v4, %v1089_v15 }
 0xff0   :  { %v1104_v25 = vmul.f32 %v1093_v20, %v1893_v53 }
 0xff1   :  { %v1097_v19 = vmul.f32 0.5, %v1096_v16 }
 0xff2   :  { %v1108_v1 = vmul.f32 %v1107_v24, %v1104_v25 }
 0xff3   :  { %v1098_v38 = vsub.f32 1.5, %v1097_v19 }
 0xff5   :  { %v1099_v22 = vmul.f32 %v1552_v11, %v1098_v38 }
 0xff7   :  { %v1103_v26 = vsel %vm1102_vm8, %v1552_v11, %v1099_v22  ;;  %vm1299_vm8 = vcmask 3072  }
 0xff8   :  { %v1105_v27 = vmul.f32 %v1103_v26, %v1899_v13 }
 0xffa   :  { %v1109_v28 = vmul.f32 %v1107_v24, %v1105_v27 }
 0xffc   :  { %v1110_v29 = vpack.c.bf16 %v1109_v28, %v1108_v1 }
 0xffe   :  { %1434 = vmatmul.msk.bf16.vlgmr.msrb.gmra.mxu1 %vm159_vm3, %v1110_v29 }
0x107b   :  { %v1135_v31 = vpop.f32.mrf.mxu1 }
0x107c   :  { %1182 = vrot.lane.b32.xlu1 %v1135_v31, %s1573_s3  ;;  %v1435_v17 = vmul.f32 -1.442695, %v1135_v31 }
0x107e   :  { %1553 = vpow2.f32 %v1435_v17  ;;  %v1276_v17 = vunpack.c.l.bf16 %v42_v32 }
0x1080   :  { %v1277_v41 = vperm.slane %v1276_v17, 0 }
0x1083   :  { %v1137_v21 = vpop.f32.mrf.mxu1 }
0x1084   :  { %1184 = vrot.lane.b32.xlu1 %v1137_v21, %s1573_s3  ;;  %v1436_v34 = vmul.f32 -1.442695, %v1137_v21  ;;  %v1554_v35 = vpop.eup %1553 }
0x1085   :  { %v1146_v37 = vadd.f32 1.0, %v1554_v35 }
0x1086   :  { %1555 = vpow2.f32 %v1436_v34 }
0x1087   :  { %1557 = vrcp.f32 %v1146_v37  ;;  %vm1153_vm13 = vweird.f32 %v1146_v37  ;;  %v1159_v60 = vand.u32 2147483648, %v1146_v37  ;;  %v1157_v55 = vand.u32 2147483647, %v1146_v37 }
0x1089   :  { %v1160_v58 = vor.u32 1.1754944e-38, %v1159_v60  ;;  %vm1158_vm2 = vcmp.eq.f32.partialorder %v1157_v55, 8.507059e+37 }
0x108c   :  { %v1556_v36 = vpop.eup %1555 }
0x108d   :  { %v1147_v18 = vadd.f32 1.0, %v1556_v36  ;;  %v1558_v43 = vpop.eup %1557 }
0x108e   :  { %v1149_v45 = vmul.f32 %v1558_v43, %v1146_v37  ;;  %vm1154_vm9 = vweird.f32 %v1558_v43 }
0x108f   :  { %1559 = vrcp.f32 %v1147_v18  ;;  %v1174_v52 = vand.u32 2147483648, %v1147_v18  ;;  %vm1168_vm14 = vweird.f32 %v1147_v18  ;;  %v1172_v54 = vand.u32 2147483647, %v1147_v18  ;;  %vm1155_vm15 = vmor %vm1153_vm13, %vm1154_vm9 }
0x1090   :  { %v1150_v47 = vsub.f32 1.0, %v1149_v45 }
0x1091   :  { %v1175_v62 = vor.u32 1.1754944e-38, %v1174_v52  ;;  %vm1173_vm1 = vcmp.eq.f32.partialorder %v1172_v54, 8.507059e+37 }
0x1092   :  { %v1151_v49 = vmul.f32 %v1558_v43, %v1150_v47 }
0x1094   :  { %v1152_v51 = vadd.f32 %v1558_v43, %v1151_v49 }
0x1095   :  { %v1560_v44 = vpop.eup %1559 }
0x1096   :  { %v1164_v23 = vmul.f32 %v1560_v44, %v1147_v18  ;;  %vm1169_vm10 = vweird.f32 %v1560_v44  ;;  %v1156_v0 = vsel %vm1155_vm15, %v1558_v43, %v1152_v51 }
0x1097   :  { %vm1170_vm0 = vmor %vm1168_vm14, %vm1169_vm10  ;;  %v1161_v61 = vsel %vm1158_vm2, %v1160_v58, %v1156_v0 }
0x1098   :  { %v1165_v46 = vsub.f32 1.0, %v1164_v23  ;;  %v1178_v63 = vmul.f32 %v1161_v61, %v1135_v31 }
0x109a   :  { %v1166_v48 = vmul.f32 %v1560_v44, %v1165_v46 }
0x109c   :  { %v1167_v50 = vadd.f32 %v1560_v44, %v1166_v48 }
0x109e   :  { %v1171_v57 = vsel %vm1170_vm0, %v1560_v44, %v1167_v50 }
0x109f   :  { %v1176_v59 = vsel %vm1173_vm1, %v1175_v62, %v1171_v57  ;;  %v1294_v62 = vstv %s1960_s4 }
0x10a0   :  { %v1179_v8 = vmul.f32 %v1176_v59, %v1137_v21 }
0x10ee   :  { %v1183_v56 = vpop.permute.xlu1 %1182 }
0x10ef   :  { %v1188_v2 = vmul.f32 %v1183_v56, %v1178_v63 }
0x10f6   :  { %v1185_v7 = vpop.permute.xlu1 %1184 }
0x10f7   :  { %v1189_v3 = vmul.f32 %v1185_v7, %v1179_v8 }
0x10f9   :  { %v1190_v4 = vpack.c.bf16 %v1189_v3, %v1188_v2 }
0x10fb   :  { %1453 = vmatmul.msk.bf16.vlgmr.msrb.gmra.mxu2 %vm675_vm12, %v1190_v4 }
0x117e   :  { %v1227_v5 = vpop.f32.mrf.mxu2 }
0x117f   :  { %v1232_v6 = vpack.c.bf16 %v1227_v5, %v1227_v5 }
0x1181   :  { %v1234_v30 = vunpack.c.l.bf16 %v1232_v6 }
0x1183   :  { %v1236_v9 = vadd.f32 %v1234_v30, %v1893_v53 }
0x1185   :  { %v1238_v10 = vpack.c.bf16 %v1236_v9, %v1236_v9 }
0x1186   :  { %v1229_v11 = vpop.f32.mrf.mxu2 }
0x1187   :  { %v1240_v39 = vunpack.c.l.bf16 %v1238_v10  ;;  %v1233_v12 = vpack.c.bf16 %v1229_v11, %v1229_v11 }
0x1189   :  { %v1235_v15 = vunpack.c.l.bf16 %v1233_v12  ;;  %v1242_v16 = vmul.f32 %v1240_v39, %v1240_v39 }
0x118b   :  { %v1237_v19 = vadd.f32 %v1235_v15, %v1899_v13  ;;  %v1244_v14 = vsel %vm159_vm3, %v1242_v16, 0.0 }
0x118c   :  { %1245 = vadd.xlane.f32.xlu1 %v1244_v14 }
0x118d   :  { %v1239_v20 = vpack.c.bf16 %v1237_v19, %v1237_v19 }
0x118f   :  { %v1241_v38 = vunpack.c.l.bf16 %v1239_v20 }
0x1191   :  { %v1243_v22 = vmul.f32 %v1241_v38, %v1241_v38 }
0x1193   :  { %v1247_v24 = vsel %vm159_vm3, %v1243_v22, 0.0 }
0x1194   :  { %1248 = vadd.xlane.f32.xlu2 %v1247_v24 }
0x11ff   :  { %v1246_v25 = vpop.xlane.xlu1 %1245 }
0x1200   :  { %v1250_v53 = vmul.f32 %v1246_v25, %v1648_v33 }
0x1202   :  { %v1252_v26 = vadd.f32 1e-06, %v1250_v53 }
0x1204   :  { %1561 = vrsqrt.f32 %v1252_v26  ;;  %vm1260_vm11 = vweird.f32 %v1252_v26 }
0x1207   :  { %v1249_v27 = vpop.xlane.xlu2 %1248 }
0x1208   :  { %v1251_v1 = vmul.f32 %v1249_v27, %v1648_v33  ;;  %v43_v33 = vld [vmem:[%s1957_s2 + $0x54] sm:$0x1] }
0x1209   :  { %v44_v40 = vunpack.c.l.bf16 %v43_v33 }
0x120a   :  { %v1562_v28 = vpop.eup %1561  ;;  %v1253_v29 = vadd.f32 1e-06, %v1251_v1 }
0x120b   :  { %v1255_v13 = vmul.f32 %v1562_v28, %v1252_v26  ;;  %vm1261_vm12 = vweird.f32 %v1562_v28  ;;  %v1284_v47 = vperm.slane %v44_v40, 0 }
0x120c   :  { %1563 = vrsqrt.f32 %v1253_v29  ;;  %vm1262_vm4 = vmor %vm1260_vm11, %vm1261_vm12  ;;  %vm1270_vm6 = vweird.f32 %v1253_v29 }
0x120d   :  { %v1256_v31 = vmul.f32 %v1562_v28, %v1255_v13 }
0x120f   :  { %v1257_v21 = vmul.f32 0.5, %v1256_v31 }
0x1211   :  { %v1258_v34 = vsub.f32 1.5, %v1257_v21 }
0x1212   :  { %v1564_v35 = vpop.eup %1563 }
0x1213   :  { %v1259_v42 = vmul.f32 %v1562_v28, %v1258_v34  ;;  %v1265_v36 = vmul.f32 %v1564_v35, %v1253_v29  ;;  %vm1271_vm5 = vweird.f32 %v1564_v35 }
0x1214   :  { %vm1272_vm7 = vmor %vm1270_vm6, %vm1271_vm5 }
0x1215   :  { %v1266_v37 = vmul.f32 %v1564_v35, %v1265_v36  ;;  %v1263_v18 = vsel %vm1262_vm4, %v1562_v28, %v1259_v42 }
0x1216   :  { %v1274_v43 = vmul.f32 %v1263_v18, %v1240_v39 }
0x1217   :  { %v1267_v44 = vmul.f32 0.5, %v1266_v37 }
0x1218   :  { %v1278_v23 = vmul.f32 %v1277_v41, %v1274_v43 }
0x1219   :  { %v1268_v45 = vsub.f32 1.5, %v1267_v44 }
0x121a   :  { %v1280_v46 = vpack.c.bf16 %v1278_v23, %v1278_v23 }
0x121b   :  { %v1269_v48 = vmul.f32 %v1564_v35, %v1268_v45 }
0x121c   :  { %v1282_v49 = vunpack.c.l.bf16 %v1280_v46 }
0x121d   :  { %v1273_v50 = vsel %vm1272_vm7, %v1564_v35, %v1269_v48 }
0x121e   :  { %v1285_v51 = vmul.f32 %v1284_v47, %v1282_v49  ;;  %v1275_v52 = vmul.f32 %v1273_v50, %v1241_v38 }
0x1220   :  { %v1287_v60 = vsel %vm159_vm3, %v1285_v51, 0.0  ;;  %v1279_v54 = vmul.f32 %v1277_v41, %v1275_v52 }
0x1221   :  { %1288 = vadd.xlane.f32.xlu0 %v1287_v60 }
0x1222   :  { %v1281_v55 = vpack.c.bf16 %v1279_v54, %v1279_v54 }
0x1224   :  { %v1283_v56 = vunpack.c.l.bf16 %v1281_v55 }
0x1226   :  { %v1286_v57 = vmul.f32 %v1284_v47, %v1283_v56 }
0x1228   :  { %v1290_v0 = vsel %vm159_vm3, %v1286_v57, 0.0 }
0x1229   :  { %1291 = vadd.xlane.f32.xlu2 %v1290_v0 }
0x1294   :  { %v1289_v58 = vpop.xlane.xlu0 %1288 }
0x1295   :  { %v1295_v59 = vadd.f32 %v1294_v62, %v1289_v58 }
0x1297   :  { %v1297_v61 = vpack.c.bf16 %v1295_v59, %v1295_v59 }
0x1299   :  { %1300 = vst.msk [vmem:[%s1961_s5] sm:$0xf] %vm1299_vm8, %v1297_v61 }
0x129c   :  { %v1292_v8 = vpop.xlane.xlu2 %1291 }
0x129d   :  { %v1296_v63 = vadd.f32 %v1294_v62, %v1292_v8 }
0x129f   :  { %v1298_v7 = vpack.c.bf16 %v1296_v63, %v1296_v63 }
0x12a1   :  { %1301 = vst.msk [vmem:[%s1961_s5 + $0x4] sm:$0xf] %vm1299_vm8, %v1298_v7 }

</bundles_post_ra>
